<compile_context>
chip_gen: v6e
topology: v6e:2x2x1
jax: 0.10.0
libtpu: 0.0.40
codegen_flags: <defaults>
</compile_context>

<pallas_src>
import jax
import jax.numpy as jnp
from jax.experimental import pallas as pl
from jax.experimental.pallas import tpu as pltpu


def _pick_samples_per_block(n, per_sample_bytes, budget_bytes=4 * 1024 * 1024):
    """Largest #samples per grid block that (a) fits a modest VMEM budget,
    (b) divides N, and (c) keeps >= 2 grid steps (v7x megacore) when N >= 2."""
    nb = int(max(1, min(n, budget_bytes // max(per_sample_bytes, 1))))
    while nb > 1 and (n // nb) < 2:
        nb -= 1
    while n % nb:
        nb -= 1
    return nb


def separable_conv_block(x_nchw, w_pw, w_dw, gamma, beta, eps=1e-5):
    """Forward pass of SeparableConvBlock (train-mode BatchNorm).

    x_nchw: (N, Cin, H, W) f32
    w_pw:   (Cout, Cin)    -- nn.Conv2d(Cin, Cout, 1, bias=False).weight squeezed
    w_dw:   (C, 3, 3)      -- nn.Conv2d(C, C, 3, groups=C, bias=False).weight squeezed
    gamma, beta: (Cout,)   -- BatchNorm2d affine params
    returns (N, Cout, H-2, W-2) f32 in NCHW.
    """
    N, Cin, H, W = x_nchw.shape
    Cout = w_pw.shape[0]
    assert w_pw.shape == (Cout, Cin)
    # pw -> dw -> bn ordering in the module only type-checks for equal channels.
    assert Cin == Cout, "SeparableConvBlock.forward requires in_channels == out_channels"
    assert w_dw.shape == (Cout, 3, 3)
    assert H >= 3 and W >= 3

    Ho, Wo = H - 2, W - 2
    HW = H * W              # input flattened spatial extent (on lanes)
    HoW = Ho * W            # row-cropped flattened extent written by pass 1
    f32 = jnp.float32

    # NCHW -> (N, C, H*W) is a free reshape: spatial on lanes (lane-dense even for
    # tiny channel counts), channels on sublanes. No wrapper transposes.
    x_flat = x_nchw.reshape(N, Cin, HW).astype(f32)
    # Weights laid out so per-channel values sit on sublanes and broadcast along lanes.
    wpw_k = jnp.transpose(w_pw, (1, 0)).reshape(Cin, Cout, 1).astype(f32)     # [cin](cout,1)
    wdw_k = jnp.transpose(w_dw.reshape(Cout, 9), (1, 0)).reshape(9, Cout, 1).astype(f32)
    # Validity mask for BN stats (right-border columns of each kept row are invalid
    # VALID-conv positions). Hoisted out of the kernel — no per-step div/mod.
    col = jnp.arange(HoW, dtype=jnp.int32)
    mask = ((col % W) < Wo).astype(f32).reshape(1, HoW)

    # Pack several samples per grid step when they are small; keep >=2 grid steps.
    per_sample_bytes = 4 * (Cin * HW + Cout * HW + 2 * Cout * HoW)
    NB = _pick_samples_per_block(N, per_sample_bytes)
    grid = (N // NB,)

    # VMEM limit: allow bigger blocks on v5e/v6e (128 MiB parts) but never exceed
    # v7x's 64 MiB physical VMEM.
    blk_bytes = NB * per_sample_bytes
    vmem_limit = int(min(64 * 1024 * 1024, max(32 * 1024 * 1024, 6 * blk_bytes)))
    cparams = pltpu.CompilerParams(
        dimension_semantics=("parallel",),        # batch tiles shard across TCs on v7x
        vmem_limit_bytes=vmem_limit,
    )
    # TODO(synk): for large H*W, additionally chunk the flattened spatial axis inside
    # pass 1 (2-row halo per chunk) so the per-block footprint stays bounded on v7x's
    # 64 MiB VMEM and live temporaries stay within the vreg file.

    # ----------------------------------------------------------------- pass 1
    # pointwise 1x1 + depthwise 3x3 (VALID) + per-sample BN partial stats.
    def conv_stats_kernel(x_ref, wpw_ref, wdw_ref, mask_ref, conv_ref, stats_ref):
        for i in range(NB):                                       # static unroll
            x = x_ref[i]                                          # (Cin, HW)

            # ---- pointwise 1x1 conv -> y: (Cout, HW)
            if Cin <= 8:
                # tiny channel count: VPU broadcast multiply-adds
                y = wpw_ref[0] * x[0:1, :]
                for c in range(1, Cin):
                    y = y + wpw_ref[c] * x[c:c + 1, :]
            else:
                # moderate/large channel count: contract on the otherwise-idle MXU
                w = wpw_ref[...][:, :, 0]                         # (Cin, Cout)
                y = jax.lax.dot_general(
                    w, x, (((0,), (0,)), ((), ())),
                    preferred_element_type=jnp.float32)           # (Cout, HW)

            # ---- depthwise 3x3, VALID. Tap (kh,kw) needs y at flat offset
            # +kh*W+kw: a static lane rotation on the XLU (no staging scratch,
            # no unaligned loads). Positive shift == roll by -(kh*W+kw).
            # Wrapped lanes only land in positions that are masked out of the
            # BN stats and cropped from the output.
            acc = y * wdw_ref[0]                                  # kh=kw=0 tap
            for k in range(1, 9):
                kh, kw = divmod(k, 3)
                shift = (HW - (kh * W + kw)) % HW
                acc = acc + pltpu.roll(y, shift=shift, axis=1) * wdw_ref[k]

            # Row-crop: drop the 2 fully-invalid bottom rows before writing, so
            # all downstream HBM traffic only carries Ho*W columns.
            acc_v = acc[:, :HoW]                                  # (Cout, Ho*W)
            conv_ref[i] = acc_v

            # ---- per-sample, per-channel sum / sum-of-squares over VALID positions
            a = acc_v * mask_ref[...]
            stats_ref[i, :, 0:1] = jnp.sum(a, axis=1, keepdims=True)
            stats_ref[i, :, 1:2] = jnp.sum(a * a, axis=1, keepdims=True)

    conv_flat, stats = pl.pallas_call(
        conv_stats_kernel,
        grid=grid,
        in_specs=[
            pl.BlockSpec((NB, Cin, HW), lambda n: (n, 0, 0)),
            pl.BlockSpec((Cin, Cout, 1), lambda n: (0, 0, 0)),
            pl.BlockSpec((9, Cout, 1), lambda n: (0, 0, 0)),
            pl.BlockSpec((1, HoW), lambda n: (0, 0)),
        ],
        out_specs=(
            pl.BlockSpec((NB, Cout, HoW), lambda n: (n, 0, 0)),
            pl.BlockSpec((NB, Cout, 2), lambda n: (n, 0, 0)),
        ),
        out_shape=(
            jax.ShapeDtypeStruct((N, Cout, HoW), f32),
            jax.ShapeDtypeStruct((N, Cout, 2), f32),
        ),
        compiler_params=cparams,
    )(x_flat, wpw_k, wdw_k, mask)

    # ---------------------------------------------- tiny cross-batch reduction
    totals = jnp.sum(stats, axis=0)                               # (Cout, 2)
    cnt = jnp.float32(N * Ho * Wo)
    mean = totals[:, 0] / cnt
    # Biased (training-mode) batch variance; clamp against f32 cancellation.
    # TODO(synk): for very large N*Ho*Wo or strongly shifted activations, switch to a
    # per-channel shifted / Welford-style accumulation instead of E[x^2]-E[x]^2.
    var = jnp.maximum(totals[:, 1] / cnt - mean * mean, 0.0)
    scale = gamma.astype(f32) * jax.lax.rsqrt(var + eps)
    bias = beta.astype(f32) - mean * scale

    # ----------------------------------------------------------------- pass 2
    # normalize + ReLU, lane-dense, IN PLACE over the conv buffer (it is dead
    # afterwards) -> no second (N, Cout, Ho*W) HBM allocation.
    def bn_relu_kernel(conv_ref, scale_ref, bias_ref, o_ref):
        for i in range(NB):
            o_ref[i] = jnp.maximum(conv_ref[i] * scale_ref[...] + bias_ref[...], 0.0)

    out_flat = pl.pallas_call(
        bn_relu_kernel,
        grid=grid,
        in_specs=[
            pl.BlockSpec((NB, Cout, HoW), lambda n: (n, 0, 0)),
            pl.BlockSpec((Cout, 1), lambda n: (0, 0)),
            pl.BlockSpec((Cout, 1), lambda n: (0, 0)),
        ],
        out_specs=pl.BlockSpec((NB, Cout, HoW), lambda n: (n, 0, 0)),
        out_shape=jax.ShapeDtypeStruct((N, Cout, HoW), f32),
        input_output_aliases={0: 0},
        compiler_params=cparams,
    )(conv_flat, scale.reshape(Cout, 1), bias.reshape(Cout, 1))

    # Per-row right-border column crop back to NCHW (N, Cout, Ho, Wo).
    # TODO(synk): compact valid columns inside pass 2 (per-row lane shifts) to drop
    # this last XLA slice as well; skipped here to keep stores lane-dense.
    return out_flat.reshape(N, Cout, Ho, W)[:, :, :, :Wo]


def _reference(x, w_pw, w_dw, gamma, beta, eps=1e-5):
    """Pure-JAX NCHW reference mirroring the PyTorch forward (train-mode BN)."""
    y = jnp.einsum('oc,nchw->nohw', w_pw, x)                      # pw 1x1
    Nb, C, H, W = y.shape
    Ho, Wo = H - 2, W - 2
    acc = jnp.zeros((Nb, C, Ho, Wo), jnp.float32)
    for kh in range(3):
        for kw in range(3):
            acc = acc + y[:, :, kh:kh + Ho, kw:kw + Wo] * w_dw[:, kh, kw][None, :, None, None]
    mean = jnp.mean(acc, axis=(0, 2, 3), keepdims=True)
    var = jnp.mean((acc - mean) ** 2, axis=(0, 2, 3), keepdims=True)   # biased
    yb = (acc - mean) * jax.lax.rsqrt(var + eps)
    yb = yb * gamma[None, :, None, None] + beta[None, :, None, None]
    return jnp.maximum(yb, 0.0)


if __name__ == "__main__":
    # in_channels == out_channels is required by the module's forward ordering.
    # N=4 exercises the multi-sample-per-block path (NB=2, grid=2).
    N, C, H, W = 4, 8, 16, 16
    key = jax.random.PRNGKey(0)
    kx, kpw, kdw, kg, kb = jax.random.split(key, 5)

    x = jax.random.normal(kx, (N, C, H, W), dtype=jnp.float32)
    # nn.Conv2d(C, C, 1).weight (C, C, 1, 1) -> stored as (Cout, Cin)
    w_pw = jax.random.normal(kpw, (C, C), dtype=jnp.float32) * 0.1
    # nn.Conv2d(C, C, 3, groups=C).weight (C, 1, 3, 3) -> stored as (C, 3, 3)
    w_dw = jax.random.normal(kdw, (C, 3, 3), dtype=jnp.float32) * 0.1
    # BatchNorm2d affine params (randomized to exercise scale/bias paths)
    gamma = 1.0 + 0.1 * jax.random.normal(kg, (C,), dtype=jnp.float32)
    beta = 0.1 * jax.random.normal(kb, (C,), dtype=jnp.float32)

    fwd = jax.jit(separable_conv_block)
    out = jax.block_until_ready(fwd(x, w_pw, w_dw, gamma, beta))

    ref = _reference(x, w_pw, w_dw, gamma, beta)
    assert out.shape == (N, C, H - 2, W - 2), out.shape
    max_err = float(jnp.max(jnp.abs(out - ref)))
    assert jnp.allclose(out, ref, atol=2e-4, rtol=2e-4), max_err

    print("KERNEL_OK")
</pallas_src>

<mosaic_0001>
module attributes {stable_mosaic.version = 11 : i64} {
  func.func @conv_stats_kernel(%arg0: i32, %arg1: memref<2x8x256xf32, #tpu.memory_space<vmem>>, %arg2: memref<8x8x1xf32, #tpu.memory_space<vmem>>, %arg3: memref<9x8x1xf32, #tpu.memory_space<vmem>>, %arg4: memref<1x224xf32, #tpu.memory_space<vmem>>, %arg5: memref<2x8x224xf32, #tpu.memory_space<vmem>>, %arg6: memref<2x8x2xf32, #tpu.memory_space<vmem>>) attributes {dimension_semantics = [#tpu.dimension_semantics<parallel>], iteration_bounds = array<i64: 2>, scalar_prefetch = 0 : i64, scratch_operands = 0 : i64, tpu.core_type = #tpu.core_type<tc>, window_params = [{transform_indices = @transform_0, window_bounds = array<i64: 2, 8, 256>}, {pipeline_mode = #tpu.pipeline_mode<synchronous>, transform_indices = @transform_1, window_bounds = array<i64: 8, 8, 1>}, {pipeline_mode = #tpu.pipeline_mode<synchronous>, transform_indices = @transform_2, window_bounds = array<i64: 9, 8, 1>}, {pipeline_mode = #tpu.pipeline_mode<synchronous>, transform_indices = @transform_3, window_bounds = array<i64: 1, 224>}, {transform_indices = @transform_4, window_bounds = array<i64: 2, 8, 224>}, {transform_indices = @transform_5, window_bounds = array<i64: 2, 8, 2>}]} {
    %c0 = arith.constant 0 : index
    %c0_0 = arith.constant 0 : index
    %c0_1 = arith.constant 0 : index
    %0 = vector.load %arg1[%c0, %c0_0, %c0_1] : memref<2x8x256xf32, #tpu.memory_space<vmem>>, vector<1x8x256xf32>
    %1 = vector.shape_cast %0 : vector<1x8x256xf32> to vector<8x256xf32>
    %c0_2 = arith.constant 0 : index
    %c0_3 = arith.constant 0 : index
    %c0_4 = arith.constant 0 : index
    %2 = vector.load %arg2[%c0_2, %c0_3, %c0_4] : memref<8x8x1xf32, #tpu.memory_space<vmem>>, vector<1x8x1xf32>
    %3 = vector.shape_cast %2 : vector<1x8x1xf32> to vector<8x1xf32>
    %4 = vector.extract_strided_slice %1 {offsets = [0, 0], sizes = [1, 256], strides = [1, 1]} : vector<8x256xf32> to vector<1x256xf32>
    %5 = vector.broadcast %3 : vector<8x1xf32> to vector<8x256xf32>
    %6 = vector.broadcast %4 : vector<1x256xf32> to vector<8x256xf32>
    %7 = arith.mulf %5, %6 : vector<8x256xf32>
    %c1 = arith.constant 1 : index
    %c0_5 = arith.constant 0 : index
    %c0_6 = arith.constant 0 : index
    %8 = vector.load %arg2[%c1, %c0_5, %c0_6] : memref<8x8x1xf32, #tpu.memory_space<vmem>>, vector<1x8x1xf32>
    %9 = vector.shape_cast %8 : vector<1x8x1xf32> to vector<8x1xf32>
    %10 = vector.extract_strided_slice %1 {offsets = [1, 0], sizes = [1, 256], strides = [1, 1]} : vector<8x256xf32> to vector<1x256xf32>
    %11 = vector.broadcast %9 : vector<8x1xf32> to vector<8x256xf32>
    %12 = vector.broadcast %10 : vector<1x256xf32> to vector<8x256xf32>
    %13 = arith.mulf %11, %12 : vector<8x256xf32>
    %14 = arith.addf %7, %13 : vector<8x256xf32>
    %c2 = arith.constant 2 : index
    %c0_7 = arith.constant 0 : index
    %c0_8 = arith.constant 0 : index
    %15 = vector.load %arg2[%c2, %c0_7, %c0_8] : memref<8x8x1xf32, #tpu.memory_space<vmem>>, vector<1x8x1xf32>
    %16 = vector.shape_cast %15 : vector<1x8x1xf32> to vector<8x1xf32>
    %17 = vector.extract_strided_slice %1 {offsets = [2, 0], sizes = [1, 256], strides = [1, 1]} : vector<8x256xf32> to vector<1x256xf32>
    %18 = vector.broadcast %16 : vector<8x1xf32> to vector<8x256xf32>
    %19 = vector.broadcast %17 : vector<1x256xf32> to vector<8x256xf32>
    %20 = arith.mulf %18, %19 : vector<8x256xf32>
    %21 = arith.addf %14, %20 : vector<8x256xf32>
    %c3 = arith.constant 3 : index
    %c0_9 = arith.constant 0 : index
    %c0_10 = arith.constant 0 : index
    %22 = vector.load %arg2[%c3, %c0_9, %c0_10] : memref<8x8x1xf32, #tpu.memory_space<vmem>>, vector<1x8x1xf32>
    %23 = vector.shape_cast %22 : vector<1x8x1xf32> to vector<8x1xf32>
    %24 = vector.extract_strided_slice %1 {offsets = [3, 0], sizes = [1, 256], strides = [1, 1]} : vector<8x256xf32> to vector<1x256xf32>
    %25 = vector.broadcast %23 : vector<8x1xf32> to vector<8x256xf32>
    %26 = vector.broadcast %24 : vector<1x256xf32> to vector<8x256xf32>
    %27 = arith.mulf %25, %26 : vector<8x256xf32>
    %28 = arith.addf %21, %27 : vector<8x256xf32>
    %c4 = arith.constant 4 : index
    %c0_11 = arith.constant 0 : index
    %c0_12 = arith.constant 0 : index
    %29 = vector.load %arg2[%c4, %c0_11, %c0_12] : memref<8x8x1xf32, #tpu.memory_space<vmem>>, vector<1x8x1xf32>
    %30 = vector.shape_cast %29 : vector<1x8x1xf32> to vector<8x1xf32>
    %31 = vector.extract_strided_slice %1 {offsets = [4, 0], sizes = [1, 256], strides = [1, 1]} : vector<8x256xf32> to vector<1x256xf32>
    %32 = vector.broadcast %30 : vector<8x1xf32> to vector<8x256xf32>
    %33 = vector.broadcast %31 : vector<1x256xf32> to vector<8x256xf32>
    %34 = arith.mulf %32, %33 : vector<8x256xf32>
    %35 = arith.addf %28, %34 : vector<8x256xf32>
    %c5 = arith.constant 5 : index
    %c0_13 = arith.constant 0 : index
    %c0_14 = arith.constant 0 : index
    %36 = vector.load %arg2[%c5, %c0_13, %c0_14] : memref<8x8x1xf32, #tpu.memory_space<vmem>>, vector<1x8x1xf32>
    %37 = vector.shape_cast %36 : vector<1x8x1xf32> to vector<8x1xf32>
    %38 = vector.extract_strided_slice %1 {offsets = [5, 0], sizes = [1, 256], strides = [1, 1]} : vector<8x256xf32> to vector<1x256xf32>
    %39 = vector.broadcast %37 : vector<8x1xf32> to vector<8x256xf32>
    %40 = vector.broadcast %38 : vector<1x256xf32> to vector<8x256xf32>
    %41 = arith.mulf %39, %40 : vector<8x256xf32>
    %42 = arith.addf %35, %41 : vector<8x256xf32>
    %c6 = arith.constant 6 : index
    %c0_15 = arith.constant 0 : index
    %c0_16 = arith.constant 0 : index
    %43 = vector.load %arg2[%c6, %c0_15, %c0_16] : memref<8x8x1xf32, #tpu.memory_space<vmem>>, vector<1x8x1xf32>
    %44 = vector.shape_cast %43 : vector<1x8x1xf32> to vector<8x1xf32>
    %45 = vector.extract_strided_slice %1 {offsets = [6, 0], sizes = [1, 256], strides = [1, 1]} : vector<8x256xf32> to vector<1x256xf32>
    %46 = vector.broadcast %44 : vector<8x1xf32> to vector<8x256xf32>
    %47 = vector.broadcast %45 : vector<1x256xf32> to vector<8x256xf32>
    %48 = arith.mulf %46, %47 : vector<8x256xf32>
    %49 = arith.addf %42, %48 : vector<8x256xf32>
    %c7 = arith.constant 7 : index
    %c0_17 = arith.constant 0 : index
    %c0_18 = arith.constant 0 : index
    %50 = vector.load %arg2[%c7, %c0_17, %c0_18] : memref<8x8x1xf32, #tpu.memory_space<vmem>>, vector<1x8x1xf32>
    %51 = vector.shape_cast %50 : vector<1x8x1xf32> to vector<8x1xf32>
    %52 = vector.extract_strided_slice %1 {offsets = [7, 0], sizes = [1, 256], strides = [1, 1]} : vector<8x256xf32> to vector<1x256xf32>
    %53 = vector.broadcast %51 : vector<8x1xf32> to vector<8x256xf32>
    %54 = vector.broadcast %52 : vector<1x256xf32> to vector<8x256xf32>
    %55 = arith.mulf %53, %54 : vector<8x256xf32>
    %56 = arith.addf %49, %55 : vector<8x256xf32>
    %c0_19 = arith.constant 0 : index
    %c0_20 = arith.constant 0 : index
    %c0_21 = arith.constant 0 : index
    %57 = vector.load %arg3[%c0_19, %c0_20, %c0_21] : memref<9x8x1xf32, #tpu.memory_space<vmem>>, vector<1x8x1xf32>
    %58 = vector.shape_cast %57 : vector<1x8x1xf32> to vector<8x1xf32>
    %59 = vector.broadcast %58 : vector<8x1xf32> to vector<8x256xf32>
    %60 = arith.mulf %56, %59 : vector<8x256xf32>
    %c255_i32 = arith.constant 255 : i32
    %61 = tpu.dynamic_rotate %56 by %c255_i32 dim 1 : vector<8x256xf32>, i32 -> vector<8x256xf32>
    %c1_22 = arith.constant 1 : index
    %c0_23 = arith.constant 0 : index
    %c0_24 = arith.constant 0 : index
    %62 = vector.load %arg3[%c1_22, %c0_23, %c0_24] : memref<9x8x1xf32, #tpu.memory_space<vmem>>, vector<1x8x1xf32>
    %63 = vector.shape_cast %62 : vector<1x8x1xf32> to vector<8x1xf32>
    %64 = vector.broadcast %63 : vector<8x1xf32> to vector<8x256xf32>
    %65 = arith.mulf %61, %64 : vector<8x256xf32>
    %66 = arith.addf %60, %65 : vector<8x256xf32>
    %c254_i32 = arith.constant 254 : i32
    %67 = tpu.dynamic_rotate %56 by %c254_i32 dim 1 : vector<8x256xf32>, i32 -> vector<8x256xf32>
    %c2_25 = arith.constant 2 : index
    %c0_26 = arith.constant 0 : index
    %c0_27 = arith.constant 0 : index
    %68 = vector.load %arg3[%c2_25, %c0_26, %c0_27] : memref<9x8x1xf32, #tpu.memory_space<vmem>>, vector<1x8x1xf32>
    %69 = vector.shape_cast %68 : vector<1x8x1xf32> to vector<8x1xf32>
    %70 = vector.broadcast %69 : vector<8x1xf32> to vector<8x256xf32>
    %71 = arith.mulf %67, %70 : vector<8x256xf32>
    %72 = arith.addf %66, %71 : vector<8x256xf32>
    %c240_i32 = arith.constant 240 : i32
    %73 = tpu.dynamic_rotate %56 by %c240_i32 dim 1 : vector<8x256xf32>, i32 -> vector<8x256xf32>
    %c3_28 = arith.constant 3 : index
    %c0_29 = arith.constant 0 : index
    %c0_30 = arith.constant 0 : index
    %74 = vector.load %arg3[%c3_28, %c0_29, %c0_30] : memref<9x8x1xf32, #tpu.memory_space<vmem>>, vector<1x8x1xf32>
    %75 = vector.shape_cast %74 : vector<1x8x1xf32> to vector<8x1xf32>
    %76 = vector.broadcast %75 : vector<8x1xf32> to vector<8x256xf32>
    %77 = arith.mulf %73, %76 : vector<8x256xf32>
    %78 = arith.addf %72, %77 : vector<8x256xf32>
    %c239_i32 = arith.constant 239 : i32
    %79 = tpu.dynamic_rotate %56 by %c239_i32 dim 1 : vector<8x256xf32>, i32 -> vector<8x256xf32>
    %c4_31 = arith.constant 4 : index
    %c0_32 = arith.constant 0 : index
    %c0_33 = arith.constant 0 : index
    %80 = vector.load %arg3[%c4_31, %c0_32, %c0_33] : memref<9x8x1xf32, #tpu.memory_space<vmem>>, vector<1x8x1xf32>
    %81 = vector.shape_cast %80 : vector<1x8x1xf32> to vector<8x1xf32>
    %82 = vector.broadcast %81 : vector<8x1xf32> to vector<8x256xf32>
    %83 = arith.mulf %79, %82 : vector<8x256xf32>
    %84 = arith.addf %78, %83 : vector<8x256xf32>
    %c238_i32 = arith.constant 238 : i32
    %85 = tpu.dynamic_rotate %56 by %c238_i32 dim 1 : vector<8x256xf32>, i32 -> vector<8x256xf32>
    %c5_34 = arith.constant 5 : index
    %c0_35 = arith.constant 0 : index
    %c0_36 = arith.constant 0 : index
    %86 = vector.load %arg3[%c5_34, %c0_35, %c0_36] : memref<9x8x1xf32, #tpu.memory_space<vmem>>, vector<1x8x1xf32>
    %87 = vector.shape_cast %86 : vector<1x8x1xf32> to vector<8x1xf32>
    %88 = vector.broadcast %87 : vector<8x1xf32> to vector<8x256xf32>
    %89 = arith.mulf %85, %88 : vector<8x256xf32>
    %90 = arith.addf %84, %89 : vector<8x256xf32>
    %c224_i32 = arith.constant 224 : i32
    %91 = tpu.dynamic_rotate %56 by %c224_i32 dim 1 : vector<8x256xf32>, i32 -> vector<8x256xf32>
    %c6_37 = arith.constant 6 : index
    %c0_38 = arith.constant 0 : index
    %c0_39 = arith.constant 0 : index
    %92 = vector.load %arg3[%c6_37, %c0_38, %c0_39] : memref<9x8x1xf32, #tpu.memory_space<vmem>>, vector<1x8x1xf32>
    %93 = vector.shape_cast %92 : vector<1x8x1xf32> to vector<8x1xf32>
    %94 = vector.broadcast %93 : vector<8x1xf32> to vector<8x256xf32>
    %95 = arith.mulf %91, %94 : vector<8x256xf32>
    %96 = arith.addf %90, %95 : vector<8x256xf32>
    %c223_i32 = arith.constant 223 : i32
    %97 = tpu.dynamic_rotate %56 by %c223_i32 dim 1 : vector<8x256xf32>, i32 -> vector<8x256xf32>
    %c7_40 = arith.constant 7 : index
    %c0_41 = arith.constant 0 : index
    %c0_42 = arith.constant 0 : index
    %98 = vector.load %arg3[%c7_40, %c0_41, %c0_42] : memref<9x8x1xf32, #tpu.memory_space<vmem>>, vector<1x8x1xf32>
    %99 = vector.shape_cast %98 : vector<1x8x1xf32> to vector<8x1xf32>
    %100 = vector.broadcast %99 : vector<8x1xf32> to vector<8x256xf32>
    %101 = arith.mulf %97, %100 : vector<8x256xf32>
    %102 = arith.addf %96, %101 : vector<8x256xf32>
    %c222_i32 = arith.constant 222 : i32
    %103 = tpu.dynamic_rotate %56 by %c222_i32 dim 1 : vector<8x256xf32>, i32 -> vector<8x256xf32>
    %c8 = arith.constant 8 : index
    %c0_43 = arith.constant 0 : index
    %c0_44 = arith.constant 0 : index
    %104 = vector.load %arg3[%c8, %c0_43, %c0_44] : memref<9x8x1xf32, #tpu.memory_space<vmem>>, vector<1x8x1xf32>
    %105 = vector.shape_cast %104 : vector<1x8x1xf32> to vector<8x1xf32>
    %106 = vector.broadcast %105 : vector<8x1xf32> to vector<8x256xf32>
    %107 = arith.mulf %103, %106 : vector<8x256xf32>
    %108 = arith.addf %102, %107 : vector<8x256xf32>
    %109 = vector.extract_strided_slice %108 {offsets = [0, 0], sizes = [8, 224], strides = [1, 1]} : vector<8x256xf32> to vector<8x224xf32>
    %c0_45 = arith.constant 0 : index
    %c0_46 = arith.constant 0 : index
    %c0_47 = arith.constant 0 : index
    %110 = vector.load %arg5[%c0_45, %c0_46, %c0_47] : memref<2x8x224xf32, #tpu.memory_space<vmem>>, vector<1x8x224xf32>
    %111 = vector.shape_cast %110 : vector<1x8x224xf32> to vector<8x224xf32>
    %112 = vector.shape_cast %109 : vector<8x224xf32> to vector<1x8x224xf32>
    tpu.vector_store %arg5[%c0_45, %c0_46, %c0_47], %112 {strides = array<i32>} : memref<2x8x224xf32, #tpu.memory_space<vmem>>, vector<1x8x224xf32>,
    %c0_48 = arith.constant 0 : index
    %c0_49 = arith.constant 0 : index
    %113 = vector.load %arg4[%c0_48, %c0_49] : memref<1x224xf32, #tpu.memory_space<vmem>>, vector<1x224xf32>
    %114 = vector.broadcast %113 : vector<1x224xf32> to vector<8x224xf32>
    %115 = arith.mulf %109, %114 : vector<8x224xf32>
    %cst = arith.constant dense<0.000000e+00> : vector<8xf32>
    %116 = vector.multi_reduction <add>, %115, %cst [1] : vector<8x224xf32> to vector<8xf32>
    %117 = vector.shape_cast %116 : vector<8xf32> to vector<8x1xf32>
    %c0_50 = arith.constant 0 : index
    %c0_51 = arith.constant 0 : index
    %c0_52 = arith.constant 0 : index
    %118 = vector.load %arg6[%c0_50, %c0_51, %c0_52] : memref<2x8x2xf32, #tpu.memory_space<vmem>>, vector<1x8x1xf32>
    %119 = vector.shape_cast %118 : vector<1x8x1xf32> to vector<8x1xf32>
    %120 = vector.shape_cast %117 : vector<8x1xf32> to vector<1x8x1xf32>
    tpu.vector_store %arg6[%c0_50, %c0_51, %c0_52], %120 {strides = array<i32>} : memref<2x8x2xf32, #tpu.memory_space<vmem>>, vector<1x8x1xf32>,
    %121 = arith.mulf %115, %115 : vector<8x224xf32>
    %cst_53 = arith.constant dense<0.000000e+00> : vector<8xf32>
    %122 = vector.multi_reduction <add>, %121, %cst_53 [1] : vector<8x224xf32> to vector<8xf32>
    %123 = vector.shape_cast %122 : vector<8xf32> to vector<8x1xf32>
    %c0_54 = arith.constant 0 : index
    %c0_55 = arith.constant 0 : index
    %c1_56 = arith.constant 1 : index
    %124 = vector.load %arg6[%c0_54, %c0_55, %c1_56] : memref<2x8x2xf32, #tpu.memory_space<vmem>>, vector<1x8x1xf32>
    %125 = vector.shape_cast %124 : vector<1x8x1xf32> to vector<8x1xf32>
    %126 = vector.shape_cast %123 : vector<8x1xf32> to vector<1x8x1xf32>
    tpu.vector_store %arg6[%c0_54, %c0_55, %c1_56], %126 {strides = array<i32>} : memref<2x8x2xf32, #tpu.memory_space<vmem>>, vector<1x8x1xf32>,
    %c1_57 = arith.constant 1 : index
    %c0_58 = arith.constant 0 : index
    %c0_59 = arith.constant 0 : index
    %127 = vector.load %arg1[%c1_57, %c0_58, %c0_59] : memref<2x8x256xf32, #tpu.memory_space<vmem>>, vector<1x8x256xf32>
    %128 = vector.shape_cast %127 : vector<1x8x256xf32> to vector<8x256xf32>
    %c0_60 = arith.constant 0 : index
    %c0_61 = arith.constant 0 : index
    %c0_62 = arith.constant 0 : index
    %129 = vector.load %arg2[%c0_60, %c0_61, %c0_62] : memref<8x8x1xf32, #tpu.memory_space<vmem>>, vector<1x8x1xf32>
    %130 = vector.shape_cast %129 : vector<1x8x1xf32> to vector<8x1xf32>
    %131 = vector.extract_strided_slice %128 {offsets = [0, 0], sizes = [1, 256], strides = [1, 1]} : vector<8x256xf32> to vector<1x256xf32>
    %132 = vector.broadcast %130 : vector<8x1xf32> to vector<8x256xf32>
    %133 = vector.broadcast %131 : vector<1x256xf32> to vector<8x256xf32>
    %134 = arith.mulf %132, %133 : vector<8x256xf32>
    %c1_63 = arith.constant 1 : index
    %c0_64 = arith.constant 0 : index
    %c0_65 = arith.constant 0 : index
    %135 = vector.load %arg2[%c1_63, %c0_64, %c0_65] : memref<8x8x1xf32, #tpu.memory_space<vmem>>, vector<1x8x1xf32>
    %136 = vector.shape_cast %135 : vector<1x8x1xf32> to vector<8x1xf32>
    %137 = vector.extract_strided_slice %128 {offsets = [1, 0], sizes = [1, 256], strides = [1, 1]} : vector<8x256xf32> to vector<1x256xf32>
    %138 = vector.broadcast %136 : vector<8x1xf32> to vector<8x256xf32>
    %139 = vector.broadcast %137 : vector<1x256xf32> to vector<8x256xf32>
    %140 = arith.mulf %138, %139 : vector<8x256xf32>
    %141 = arith.addf %134, %140 : vector<8x256xf32>
    %c2_66 = arith.constant 2 : index
    %c0_67 = arith.constant 0 : index
    %c0_68 = arith.constant 0 : index
    %142 = vector.load %arg2[%c2_66, %c0_67, %c0_68] : memref<8x8x1xf32, #tpu.memory_space<vmem>>, vector<1x8x1xf32>
    %143 = vector.shape_cast %142 : vector<1x8x1xf32> to vector<8x1xf32>
    %144 = vector.extract_strided_slice %128 {offsets = [2, 0], sizes = [1, 256], strides = [1, 1]} : vector<8x256xf32> to vector<1x256xf32>
    %145 = vector.broadcast %143 : vector<8x1xf32> to vector<8x256xf32>
    %146 = vector.broadcast %144 : vector<1x256xf32> to vector<8x256xf32>
    %147 = arith.mulf %145, %146 : vector<8x256xf32>
    %148 = arith.addf %141, %147 : vector<8x256xf32>
    %c3_69 = arith.constant 3 : index
    %c0_70 = arith.constant 0 : index
    %c0_71 = arith.constant 0 : index
    %149 = vector.load %arg2[%c3_69, %c0_70, %c0_71] : memref<8x8x1xf32, #tpu.memory_space<vmem>>, vector<1x8x1xf32>
    %150 = vector.shape_cast %149 : vector<1x8x1xf32> to vector<8x1xf32>
    %151 = vector.extract_strided_slice %128 {offsets = [3, 0], sizes = [1, 256], strides = [1, 1]} : vector<8x256xf32> to vector<1x256xf32>
    %152 = vector.broadcast %150 : vector<8x1xf32> to vector<8x256xf32>
    %153 = vector.broadcast %151 : vector<1x256xf32> to vector<8x256xf32>
    %154 = arith.mulf %152, %153 : vector<8x256xf32>
    %155 = arith.addf %148, %154 : vector<8x256xf32>
    %c4_72 = arith.constant 4 : index
    %c0_73 = arith.constant 0 : index
    %c0_74 = arith.constant 0 : index
    %156 = vector.load %arg2[%c4_72, %c0_73, %c0_74] : memref<8x8x1xf32, #tpu.memory_space<vmem>>, vector<1x8x1xf32>
    %157 = vector.shape_cast %156 : vector<1x8x1xf32> to vector<8x1xf32>
    %158 = vector.extract_strided_slice %128 {offsets = [4, 0], sizes = [1, 256], strides = [1, 1]} : vector<8x256xf32> to vector<1x256xf32>
    %159 = vector.broadcast %157 : vector<8x1xf32> to vector<8x256xf32>
    %160 = vector.broadcast %158 : vector<1x256xf32> to vector<8x256xf32>
    %161 = arith.mulf %159, %160 : vector<8x256xf32>
    %162 = arith.addf %155, %161 : vector<8x256xf32>
    %c5_75 = arith.constant 5 : index
    %c0_76 = arith.constant 0 : index
    %c0_77 = arith.constant 0 : index
    %163 = vector.load %arg2[%c5_75, %c0_76, %c0_77] : memref<8x8x1xf32, #tpu.memory_space<vmem>>, vector<1x8x1xf32>
    %164 = vector.shape_cast %163 : vector<1x8x1xf32> to vector<8x1xf32>
    %165 = vector.extract_strided_slice %128 {offsets = [5, 0], sizes = [1, 256], strides = [1, 1]} : vector<8x256xf32> to vector<1x256xf32>
    %166 = vector.broadcast %164 : vector<8x1xf32> to vector<8x256xf32>
    %167 = vector.broadcast %165 : vector<1x256xf32> to vector<8x256xf32>
    %168 = arith.mulf %166, %167 : vector<8x256xf32>
    %169 = arith.addf %162, %168 : vector<8x256xf32>
    %c6_78 = arith.constant 6 : index
    %c0_79 = arith.constant 0 : index
    %c0_80 = arith.constant 0 : index
    %170 = vector.load %arg2[%c6_78, %c0_79, %c0_80] : memref<8x8x1xf32, #tpu.memory_space<vmem>>, vector<1x8x1xf32>
    %171 = vector.shape_cast %170 : vector<1x8x1xf32> to vector<8x1xf32>
    %172 = vector.extract_strided_slice %128 {offsets = [6, 0], sizes = [1, 256], strides = [1, 1]} : vector<8x256xf32> to vector<1x256xf32>
    %173 = vector.broadcast %171 : vector<8x1xf32> to vector<8x256xf32>
    %174 = vector.broadcast %172 : vector<1x256xf32> to vector<8x256xf32>
    %175 = arith.mulf %173, %174 : vector<8x256xf32>
    %176 = arith.addf %169, %175 : vector<8x256xf32>
    %c7_81 = arith.constant 7 : index
    %c0_82 = arith.constant 0 : index
    %c0_83 = arith.constant 0 : index
    %177 = vector.load %arg2[%c7_81, %c0_82, %c0_83] : memref<8x8x1xf32, #tpu.memory_space<vmem>>, vector<1x8x1xf32>
    %178 = vector.shape_cast %177 : vector<1x8x1xf32> to vector<8x1xf32>
    %179 = vector.extract_strided_slice %128 {offsets = [7, 0], sizes = [1, 256], strides = [1, 1]} : vector<8x256xf32> to vector<1x256xf32>
    %180 = vector.broadcast %178 : vector<8x1xf32> to vector<8x256xf32>
    %181 = vector.broadcast %179 : vector<1x256xf32> to vector<8x256xf32>
    %182 = arith.mulf %180, %181 : vector<8x256xf32>
    %183 = arith.addf %176, %182 : vector<8x256xf32>
    %c0_84 = arith.constant 0 : index
    %c0_85 = arith.constant 0 : index
    %c0_86 = arith.constant 0 : index
    %184 = vector.load %arg3[%c0_84, %c0_85, %c0_86] : memref<9x8x1xf32, #tpu.memory_space<vmem>>, vector<1x8x1xf32>
    %185 = vector.shape_cast %184 : vector<1x8x1xf32> to vector<8x1xf32>
    %186 = vector.broadcast %185 : vector<8x1xf32> to vector<8x256xf32>
    %187 = arith.mulf %183, %186 : vector<8x256xf32>
    %c255_i32_87 = arith.constant 255 : i32
    %188 = tpu.dynamic_rotate %183 by %c255_i32_87 dim 1 : vector<8x256xf32>, i32 -> vector<8x256xf32>
    %c1_88 = arith.constant 1 : index
    %c0_89 = arith.constant 0 : index
    %c0_90 = arith.constant 0 : index
    %189 = vector.load %arg3[%c1_88, %c0_89, %c0_90] : memref<9x8x1xf32, #tpu.memory_space<vmem>>, vector<1x8x1xf32>
    %190 = vector.shape_cast %189 : vector<1x8x1xf32> to vector<8x1xf32>
    %191 = vector.broadcast %190 : vector<8x1xf32> to vector<8x256xf32>
    %192 = arith.mulf %188, %191 : vector<8x256xf32>
    %193 = arith.addf %187, %192 : vector<8x256xf32>
    %c254_i32_91 = arith.constant 254 : i32
    %194 = tpu.dynamic_rotate %183 by %c254_i32_91 dim 1 : vector<8x256xf32>, i32 -> vector<8x256xf32>
    %c2_92 = arith.constant 2 : index
    %c0_93 = arith.constant 0 : index
    %c0_94 = arith.constant 0 : index
    %195 = vector.load %arg3[%c2_92, %c0_93, %c0_94] : memref<9x8x1xf32, #tpu.memory_space<vmem>>, vector<1x8x1xf32>
    %196 = vector.shape_cast %195 : vector<1x8x1xf32> to vector<8x1xf32>
    %197 = vector.broadcast %196 : vector<8x1xf32> to vector<8x256xf32>
    %198 = arith.mulf %194, %197 : vector<8x256xf32>
    %199 = arith.addf %193, %198 : vector<8x256xf32>
    %c240_i32_95 = arith.constant 240 : i32
    %200 = tpu.dynamic_rotate %183 by %c240_i32_95 dim 1 : vector<8x256xf32>, i32 -> vector<8x256xf32>
    %c3_96 = arith.constant 3 : index
    %c0_97 = arith.constant 0 : index
    %c0_98 = arith.constant 0 : index
    %201 = vector.load %arg3[%c3_96, %c0_97, %c0_98] : memref<9x8x1xf32, #tpu.memory_space<vmem>>, vector<1x8x1xf32>
    %202 = vector.shape_cast %201 : vector<1x8x1xf32> to vector<8x1xf32>
    %203 = vector.broadcast %202 : vector<8x1xf32> to vector<8x256xf32>
    %204 = arith.mulf %200, %203 : vector<8x256xf32>
    %205 = arith.addf %199, %204 : vector<8x256xf32>
    %c239_i32_99 = arith.constant 239 : i32
    %206 = tpu.dynamic_rotate %183 by %c239_i32_99 dim 1 : vector<8x256xf32>, i32 -> vector<8x256xf32>
    %c4_100 = arith.constant 4 : index
    %c0_101 = arith.constant 0 : index
    %c0_102 = arith.constant 0 : index
    %207 = vector.load %arg3[%c4_100, %c0_101, %c0_102] : memref<9x8x1xf32, #tpu.memory_space<vmem>>, vector<1x8x1xf32>
    %208 = vector.shape_cast %207 : vector<1x8x1xf32> to vector<8x1xf32>
    %209 = vector.broadcast %208 : vector<8x1xf32> to vector<8x256xf32>
    %210 = arith.mulf %206, %209 : vector<8x256xf32>
    %211 = arith.addf %205, %210 : vector<8x256xf32>
    %c238_i32_103 = arith.constant 238 : i32
    %212 = tpu.dynamic_rotate %183 by %c238_i32_103 dim 1 : vector<8x256xf32>, i32 -> vector<8x256xf32>
    %c5_104 = arith.constant 5 : index
    %c0_105 = arith.constant 0 : index
    %c0_106 = arith.constant 0 : index
    %213 = vector.load %arg3[%c5_104, %c0_105, %c0_106] : memref<9x8x1xf32, #tpu.memory_space<vmem>>, vector<1x8x1xf32>
    %214 = vector.shape_cast %213 : vector<1x8x1xf32> to vector<8x1xf32>
    %215 = vector.broadcast %214 : vector<8x1xf32> to vector<8x256xf32>
    %216 = arith.mulf %212, %215 : vector<8x256xf32>
    %217 = arith.addf %211, %216 : vector<8x256xf32>
    %c224_i32_107 = arith.constant 224 : i32
    %218 = tpu.dynamic_rotate %183 by %c224_i32_107 dim 1 : vector<8x256xf32>, i32 -> vector<8x256xf32>
    %c6_108 = arith.constant 6 : index
    %c0_109 = arith.constant 0 : index
    %c0_110 = arith.constant 0 : index
    %219 = vector.load %arg3[%c6_108, %c0_109, %c0_110] : memref<9x8x1xf32, #tpu.memory_space<vmem>>, vector<1x8x1xf32>
    %220 = vector.shape_cast %219 : vector<1x8x1xf32> to vector<8x1xf32>
    %221 = vector.broadcast %220 : vector<8x1xf32> to vector<8x256xf32>
    %222 = arith.mulf %218, %221 : vector<8x256xf32>
    %223 = arith.addf %217, %222 : vector<8x256xf32>
    %c223_i32_111 = arith.constant 223 : i32
    %224 = tpu.dynamic_rotate %183 by %c223_i32_111 dim 1 : vector<8x256xf32>, i32 -> vector<8x256xf32>
    %c7_112 = arith.constant 7 : index
    %c0_113 = arith.constant 0 : index
    %c0_114 = arith.constant 0 : index
    %225 = vector.load %arg3[%c7_112, %c0_113, %c0_114] : memref<9x8x1xf32, #tpu.memory_space<vmem>>, vector<1x8x1xf32>
    %226 = vector.shape_cast %225 : vector<1x8x1xf32> to vector<8x1xf32>
    %227 = vector.broadcast %226 : vector<8x1xf32> to vector<8x256xf32>
    %228 = arith.mulf %224, %227 : vector<8x256xf32>
    %229 = arith.addf %223, %228 : vector<8x256xf32>
    %c222_i32_115 = arith.constant 222 : i32
    %230 = tpu.dynamic_rotate %183 by %c222_i32_115 dim 1 : vector<8x256xf32>, i32 -> vector<8x256xf32>
    %c8_116 = arith.constant 8 : index
    %c0_117 = arith.constant 0 : index
    %c0_118 = arith.constant 0 : index
    %231 = vector.load %arg3[%c8_116, %c0_117, %c0_118] : memref<9x8x1xf32, #tpu.memory_space<vmem>>, vector<1x8x1xf32>
    %232 = vector.shape_cast %231 : vector<1x8x1xf32> to vector<8x1xf32>
    %233 = vector.broadcast %232 : vector<8x1xf32> to vector<8x256xf32>
    %234 = arith.mulf %230, %233 : vector<8x256xf32>
    %235 = arith.addf %229, %234 : vector<8x256xf32>
    %236 = vector.extract_strided_slice %235 {offsets = [0, 0], sizes = [8, 224], strides = [1, 1]} : vector<8x256xf32> to vector<8x224xf32>
    %c1_119 = arith.constant 1 : index
    %c0_120 = arith.constant 0 : index
    %c0_121 = arith.constant 0 : index
    %237 = vector.load %arg5[%c1_119, %c0_120, %c0_121] : memref<2x8x224xf32, #tpu.memory_space<vmem>>, vector<1x8x224xf32>
    %238 = vector.shape_cast %237 : vector<1x8x224xf32> to vector<8x224xf32>
    %239 = vector.shape_cast %236 : vector<8x224xf32> to vector<1x8x224xf32>
    tpu.vector_store %arg5[%c1_119, %c0_120, %c0_121], %239 {strides = array<i32>} : memref<2x8x224xf32, #tpu.memory_space<vmem>>, vector<1x8x224xf32>,
    %c0_122 = arith.constant 0 : index
    %c0_123 = arith.constant 0 : index
    %240 = vector.load %arg4[%c0_122, %c0_123] : memref<1x224xf32, #tpu.memory_space<vmem>>, vector<1x224xf32>
    %241 = vector.broadcast %240 : vector<1x224xf32> to vector<8x224xf32>
    %242 = arith.mulf %236, %241 : vector<8x224xf32>
    %cst_124 = arith.constant dense<0.000000e+00> : vector<8xf32>
    %243 = vector.multi_reduction <add>, %242, %cst_124 [1] : vector<8x224xf32> to vector<8xf32>
    %244 = vector.shape_cast %243 : vector<8xf32> to vector<8x1xf32>
    %c1_125 = arith.constant 1 : index
    %c0_126 = arith.constant 0 : index
    %c0_127 = arith.constant 0 : index
    %245 = vector.load %arg6[%c1_125, %c0_126, %c0_127] : memref<2x8x2xf32, #tpu.memory_space<vmem>>, vector<1x8x1xf32>
    %246 = vector.shape_cast %245 : vector<1x8x1xf32> to vector<8x1xf32>
    %247 = vector.shape_cast %244 : vector<8x1xf32> to vector<1x8x1xf32>
    tpu.vector_store %arg6[%c1_125, %c0_126, %c0_127], %247 {strides = array<i32>} : memref<2x8x2xf32, #tpu.memory_space<vmem>>, vector<1x8x1xf32>,
    %248 = arith.mulf %242, %242 : vector<8x224xf32>
    %cst_128 = arith.constant dense<0.000000e+00> : vector<8xf32>
    %249 = vector.multi_reduction <add>, %248, %cst_128 [1] : vector<8x224xf32> to vector<8xf32>
    %250 = vector.shape_cast %249 : vector<8xf32> to vector<8x1xf32>
    %c1_129 = arith.constant 1 : index
    %c0_130 = arith.constant 0 : index
    %c1_131 = arith.constant 1 : index
    %251 = vector.load %arg6[%c1_129, %c0_130, %c1_131] : memref<2x8x2xf32, #tpu.memory_space<vmem>>, vector<1x8x1xf32>
    %252 = vector.shape_cast %251 : vector<1x8x1xf32> to vector<8x1xf32>
    %253 = vector.shape_cast %250 : vector<8x1xf32> to vector<1x8x1xf32>
    tpu.vector_store %arg6[%c1_129, %c0_130, %c1_131], %253 {strides = array<i32>} : memref<2x8x2xf32, #tpu.memory_space<vmem>>, vector<1x8x1xf32>,
    return
  }
  func.func @transform_0(%arg0: i32) -> (i32, i32, i32) {
    %c0_i32 = arith.constant 0 : i32
    %c0_i32_0 = arith.constant 0 : i32
    %c0_i32_1 = arith.constant 0 : i32
    return %arg0, %c0_i32, %c0_i32_0 : i32, i32, i32
  }
  func.func @transform_1(%arg0: i32) -> (i32, i32, i32) {
    %c0_i32 = arith.constant 0 : i32
    %c0_i32_0 = arith.constant 0 : i32
    %c0_i32_1 = arith.constant 0 : i32
    %c0_i32_2 = arith.constant 0 : i32
    return %c0_i32, %c0_i32_0, %c0_i32_1 : i32, i32, i32
  }
  func.func @transform_2(%arg0: i32) -> (i32, i32, i32) {
    %c0_i32 = arith.constant 0 : i32
    %c0_i32_0 = arith.constant 0 : i32
    %c0_i32_1 = arith.constant 0 : i32
    %c0_i32_2 = arith.constant 0 : i32
    return %c0_i32, %c0_i32_0, %c0_i32_1 : i32, i32, i32
  }
  func.func @transform_3(%arg0: i32) -> (i32, i32) {
    %c0_i32 = arith.constant 0 : i32
    %c0_i32_0 = arith.constant 0 : i32
    %c0_i32_1 = arith.constant 0 : i32
    return %c0_i32, %c0_i32_0 : i32, i32
  }
  func.func @transform_4(%arg0: i32) -> (i32, i32, i32) {
    %c0_i32 = arith.constant 0 : i32
    %c0_i32_0 = arith.constant 0 : i32
    %c0_i32_1 = arith.constant 0 : i32
    return %arg0, %c0_i32, %c0_i32_0 : i32, i32, i32
  }
  func.func @transform_5(%arg0: i32) -> (i32, i32, i32) {
    %c0_i32 = arith.constant 0 : i32
    %c0_i32_0 = arith.constant 0 : i32
    %c0_i32_1 = arith.constant 0 : i32
    return %arg0, %c0_i32, %c0_i32_0 : i32, i32, i32
  }
}

module attributes {stable_mosaic.version = 11 : i64} {
  func.func @bn_relu_kernel(%arg0: i32, %arg1: memref<2x8x224xf32, #tpu.memory_space<vmem>>, %arg2: memref<8x1xf32, #tpu.memory_space<vmem>>, %arg3: memref<8x1xf32, #tpu.memory_space<vmem>>, %arg4: memref<2x8x224xf32, #tpu.memory_space<vmem>>) attributes {dimension_semantics = [#tpu.dimension_semantics<parallel>], iteration_bounds = array<i64: 2>, scalar_prefetch = 0 : i64, scratch_operands = 0 : i64, tpu.core_type = #tpu.core_type<tc>, window_params = [{transform_indices = @transform_0, window_bounds = array<i64: 2, 8, 224>}, {pipeline_mode = #tpu.pipeline_mode<synchronous>, transform_indices = @transform_1, window_bounds = array<i64: 8, 1>}, {pipeline_mode = #tpu.pipeline_mode<synchronous>, transform_indices = @transform_2, window_bounds = array<i64: 8, 1>}, {transform_indices = @transform_3, window_bounds = array<i64: 2, 8, 224>}]} {
    %c0 = arith.constant 0 : index
    %c0_0 = arith.constant 0 : index
    %c0_1 = arith.constant 0 : index
    %0 = vector.load %arg1[%c0, %c0_0, %c0_1] : memref<2x8x224xf32, #tpu.memory_space<vmem>>, vector<1x8x224xf32>
    %1 = vector.shape_cast %0 : vector<1x8x224xf32> to vector<8x224xf32>
    %c0_2 = arith.constant 0 : index
    %c0_3 = arith.constant 0 : index
    %2 = vector.load %arg2[%c0_2, %c0_3] : memref<8x1xf32, #tpu.memory_space<vmem>>, vector<8x1xf32>
    %3 = vector.broadcast %2 : vector<8x1xf32> to vector<8x224xf32>
    %4 = arith.mulf %1, %3 : vector<8x224xf32>
    %c0_4 = arith.constant 0 : index
    %c0_5 = arith.constant 0 : index
    %5 = vector.load %arg3[%c0_4, %c0_5] : memref<8x1xf32, #tpu.memory_space<vmem>>, vector<8x1xf32>
    %6 = vector.broadcast %5 : vector<8x1xf32> to vector<8x224xf32>
    %7 = arith.addf %4, %6 : vector<8x224xf32>
    %cst = arith.constant 0.000000e+00 : f32
    %8 = vector.broadcast %cst : f32 to vector<8x224xf32>
    %9 = arith.maximumf %7, %8 : vector<8x224xf32>
    %c0_6 = arith.constant 0 : index
    %c0_7 = arith.constant 0 : index
    %c0_8 = arith.constant 0 : index
    %10 = vector.load %arg4[%c0_6, %c0_7, %c0_8] : memref<2x8x224xf32, #tpu.memory_space<vmem>>, vector<1x8x224xf32>
    %11 = vector.shape_cast %10 : vector<1x8x224xf32> to vector<8x224xf32>
    %12 = vector.shape_cast %9 : vector<8x224xf32> to vector<1x8x224xf32>
    tpu.vector_store %arg4[%c0_6, %c0_7, %c0_8], %12 {strides = array<i32>} : memref<2x8x224xf32, #tpu.memory_space<vmem>>, vector<1x8x224xf32>,
    %c1 = arith.constant 1 : index
    %c0_9 = arith.constant 0 : index
    %c0_10 = arith.constant 0 : index
    %13 = vector.load %arg1[%c1, %c0_9, %c0_10] : memref<2x8x224xf32, #tpu.memory_space<vmem>>, vector<1x8x224xf32>
    %14 = vector.shape_cast %13 : vector<1x8x224xf32> to vector<8x224xf32>
    %c0_11 = arith.constant 0 : index
    %c0_12 = arith.constant 0 : index
    %15 = vector.load %arg2[%c0_11, %c0_12] : memref<8x1xf32, #tpu.memory_space<vmem>>, vector<8x1xf32>
    %16 = vector.broadcast %15 : vector<8x1xf32> to vector<8x224xf32>
    %17 = arith.mulf %14, %16 : vector<8x224xf32>
    %c0_13 = arith.constant 0 : index
    %c0_14 = arith.constant 0 : index
    %18 = vector.load %arg3[%c0_13, %c0_14] : memref<8x1xf32, #tpu.memory_space<vmem>>, vector<8x1xf32>
    %19 = vector.broadcast %18 : vector<8x1xf32> to vector<8x224xf32>
    %20 = arith.addf %17, %19 : vector<8x224xf32>
    %cst_15 = arith.constant 0.000000e+00 : f32
    %21 = vector.broadcast %cst_15 : f32 to vector<8x224xf32>
    %22 = arith.maximumf %20, %21 : vector<8x224xf32>
    %c1_16 = arith.constant 1 : index
    %c0_17 = arith.constant 0 : index
    %c0_18 = arith.constant 0 : index
    %23 = vector.load %arg4[%c1_16, %c0_17, %c0_18] : memref<2x8x224xf32, #tpu.memory_space<vmem>>, vector<1x8x224xf32>
    %24 = vector.shape_cast %23 : vector<1x8x224xf32> to vector<8x224xf32>
    %25 = vector.shape_cast %22 : vector<8x224xf32> to vector<1x8x224xf32>
    tpu.vector_store %arg4[%c1_16, %c0_17, %c0_18], %25 {strides = array<i32>} : memref<2x8x224xf32, #tpu.memory_space<vmem>>, vector<1x8x224xf32>,
    return
  }
  func.func @transform_0(%arg0: i32) -> (i32, i32, i32) {
    %c0_i32 = arith.constant 0 : i32
    %c0_i32_0 = arith.constant 0 : i32
    %c0_i32_1 = arith.constant 0 : i32
    return %arg0, %c0_i32, %c0_i32_0 : i32, i32, i32
  }
  func.func @transform_1(%arg0: i32) -> (i32, i32) {
    %c0_i32 = arith.constant 0 : i32
    %c0_i32_0 = arith.constant 0 : i32
    %c0_i32_1 = arith.constant 0 : i32
    return %c0_i32, %c0_i32_0 : i32, i32
  }
  func.func @transform_2(%arg0: i32) -> (i32, i32) {
    %c0_i32 = arith.constant 0 : i32
    %c0_i32_0 = arith.constant 0 : i32
    %c0_i32_1 = arith.constant 0 : i32
    return %c0_i32, %c0_i32_0 : i32, i32
  }
  func.func @transform_3(%arg0: i32) -> (i32, i32, i32) {
    %c0_i32 = arith.constant 0 : i32
    %c0_i32_0 = arith.constant 0 : i32
    %c0_i32_1 = arith.constant 0 : i32
    return %arg0, %c0_i32, %c0_i32_0 : i32, i32, i32
  }
}

</mosaic_0001>

<bundles_post_ra>
// kernel: separable_conv_block.3
= control target key start
LH: loop header
LB: loop body
LE: loop exit
PB: predicated region body
PF: predicated region fallthrough
CT: control target
= control target key end

     0   :  { %s343_s12 = smov 0   ;;  %s368_s0 = inlined_call_operand.vmem [shape: f32[4,8,224], index: 0, kind: input, shape index: {}, may-alias: {0,3}]   ;;  %s369_s1 = inlined_call_operand.vmem [shape: f32[8,1], index: 1, kind: input, shape index: {}]   ;;  %s370_s2 = inlined_call_operand.vmem [shape: f32[8,1], index: 2, kind: input, shape index: {}]   ;;  %s371_s3 = inlined_call_operand.vmem [shape: f32[4,8,224], index: 3, kind: output, shape index: {}, may-alias: {0,3}]  }
   0x1 LB: > { %s284_s13 = sadd.s32 4294967295, %s320_s12   ;;  %p288_p0 = scmp.ge.s32.totalorder %s320_s12, 1  ;;  %s320_s12 = sphi %s343_s12, %s13_s12  }
   0x2   : > { %p139_p1 = scmp.lt.s32.totalorder %s320_s12, 3 }
   0x4   : > { %p140_p2 = pnand %p288_p0, %p139_p1 }
   0x5   : > { %s289_s18 = sshll.u32 (!%p140_p2), %s284_s13, 1 }
   0x6   : > { %143 = sbr.rel (%p140_p2) target bundleno = 160 (0xa0), region = 32  ;;  %p166_p3 = scmp.lt.s32.totalorder (!%p140_p2), %s289_s18, 3 }
   0xb   : > { %v181_v0 = vld [vmem:[%s369_s1] sm:$0xff]  ;;  %v322_v1 = vmov 0   ;;  %s373_s18 = smov (!%p166_p3, %s289_s18), 3  ;;  %vm200_vm0 = vcmask 785408  }
   0xc   : > { %312 = vset.pattern.permute.xlu0 %v322_v1  ;;  %313 = vset.pattern.permute.xlu1 %v322_v1  ;;  %v189_v2 = vld [vmem:[%s370_s2] sm:$0xff]  ;;  %s301_s19 = sshll.u32 %s373_s18, 4 }
   0xd   : > { %184 = vperm.xlu0 %312, %v181_v0   ;;  %208 = vperm.xlu1 %313, %v181_v0   ;;  %s170_s22 = scalar_lea.vmem %s368_s0, %s301_s19  ;;  %s177_s25 = scalar_lea.vmem %s371_s3, %s301_s19 }
   0xe   : > { %v179_v4 = vld [vmem:[%s170_s22] sm:$0xff]  ;;  %v180_v5 = vld [vmem:[%s170_s22 + $0x8] sm:$0xff] }
  0x11   : > { %192 = vperm.xlu0 %312, %v189_v2   ;;  %216 = vperm.xlu1 %313, %v189_v2  }
  0x88   : > { %v185_v3 = vpop.permute.xlu0 %184  ;;  %v209_v13 = vpop.permute.xlu1 %208 }
  0x89   : > { %v187_v6 = vmul.f32 %v185_v3, %v179_v4  ;;  %v188_v7 = vmul.f32 %v185_v3, %v180_v5 }
  0x8c   : > { %v193_v8 = vpop.permute.xlu0 %192  ;;  %v217_v18 = vpop.permute.xlu1 %216 }
  0x8d   : > { %v195_v9 = vadd.f32 %v193_v8, %v187_v6  ;;  %v196_v10 = vadd.f32 %v193_v8, %v188_v7 }
  0x8f   : > { %v197_v11 = vmax.f32 %v195_v9, 0.0  ;;  %v198_v12 = vmax.f32 %v196_v10, 0.0 }
  0x91   : > { %199 = vst [vmem:[%s177_s25] sm:$0xff] %v197_v11  ;;  %201 = vst.msk [vmem:[%s177_s25 + $0x8] sm:$0xff] %vm200_vm0, %v198_v12 }
  0x98   : > { %v295_v14 = vld [vmem:[%s170_s22 + $0x10] sm:$0xff]  ;;  %v296_v15 = vld [vmem:[%s170_s22 + $0x18] sm:$0xff] }
  0x99   : > { %v211_v16 = vmul.f32 %v295_v14, %v209_v13  ;;  %v212_v17 = vmul.f32 %v296_v15, %v209_v13 }
  0x9b   : > { %v219_v19 = vadd.f32 %v217_v18, %v211_v16  ;;  %v220_v20 = vadd.f32 %v217_v18, %v212_v17 }
  0x9d   : > { %v221_v21 = vmax.f32 %v219_v19, 0.0  ;;  %v222_v22 = vmax.f32 %v220_v20, 0.0 }
  0x9f   : > { %297 = vst [vmem:[%s177_s25 + $0x10] sm:$0xff] %v221_v21  ;;  %298 = vst.msk [vmem:[%s177_s25 + $0x18] sm:$0xff] %vm200_vm0, %v222_v22 }
  0xa0 PF: > { %s13_s12 = sadd.s32 1, %s320_s12  }
  0xa1   : > { %p10_p4 = scmp.ge.s32.totalorder %s13_s12, 4  }
  0xa3   :  { %12 = sbr.rel (!%p10_p4) target bundleno = 1 (0x1), region = 64 }

// kernel: separable_conv_block.2
= control target key start
LH: loop header
LB: loop body
LE: loop exit
PB: predicated region body
PF: predicated region fallthrough
CT: control target
= control target key end

     0   :  { %s1105_s18 = smov 0   ;;  %s1436_s0 = inlined_call_operand.vmem [shape: f32[4,8,256], index: 0, kind: input, shape index: {}]   ;;  %s1437_s1 = inlined_call_operand.vmem [shape: f32[8,8,1], index: 1, kind: input, shape index: {}]   ;;  %s1438_s2 = inlined_call_operand.vmem [shape: f32[9,8,1], index: 2, kind: input, shape index: {}]   ;;  %s1439_s3 = inlined_call_operand.vmem [shape: f32[1,224], index: 3, kind: input, shape index: {}]   ;;  %s1440_s4 = inlined_call_operand.vmem [shape: f32[4,8,224], index: 4, kind: output, shape index: {0}]   ;;  %s1441_s5 = inlined_call_operand.vmem [shape: f32[4,8,2], index: 5, kind: output, shape index: {1}]  }
   0x1 LB: > { %s986_s19 = sadd.s32 4294967295, %s1064_s18   ;;  %p990_p0 = scmp.ge.s32.totalorder %s1064_s18, 1  ;;  %s1064_s18 = sphi %s1105_s18, %s16_s18  }
   0x2   : > { %p192_p1 = scmp.lt.s32.totalorder %s1064_s18, 3 }
   0x4   : > { %p193_p2 = pnand %p990_p0, %p192_p1 }
   0x5   : > { %s991_s6 = sshll.u32 (!%p193_p2), %s986_s19, 1  ;;  %s1067_s19 = smov (!%p193_p2), 127  }
   0x6   : > { %196 = sbr.rel (%p193_p2) target bundleno = 493 (0x1ed), region = 36  ;;  %p228_p3 = scmp.lt.s32.totalorder (!%p193_p2), %s991_s6, 3 }
   0x7   : > { %s1068_s11 = smov (!%p193_p2), 126   ;;  %s1069_s12 = smov (!%p193_p2), 112  }
   0x8   : > { %s1070_s13 = smov (!%p193_p2), 111   ;;  %s1071_s14 = smov (!%p193_p2), 110  }
   0x9   : > { %s1072_s15 = smov (!%p193_p2), 96   ;;  %s1073_s16 = smov (!%p193_p2), 95  }
   0xa   : > { %s1074_s17 = smov (!%p193_p2), 94  }
   0xb   : > { %v1000_v0 = vld [vmem:[%s1437_s1 + $0x10] sm:$0xff]  ;;  %v249_v1 = vld [vmem:[%s1437_s1] sm:$0xff]  ;;  %v1066_v2 = vmov 0   ;;  %v1001_v3 = vld [vmem:[%s1437_s1 + $0x18] sm:$0xff]  ;;  %s1443_s6 = smov (!%p228_p3, %s991_s6), 3  ;;  %v255_v18 = vlaneseq  ;;  %vm553_vm8 = vcmask 785408  }
   0xc   : > { %1057 = vset.pattern.permute.xlu1 %v1066_v2  ;;  %1056 = vset.pattern.permute.xlu0 %v1066_v2  ;;  %v999_v4 = vld [vmem:[%s1437_s1 + $0x8] sm:$0xff]  ;;  %v1002_v6 = vld [vmem:[%s1437_s1 + $0x20] sm:$0xff]  ;;  %v1004_v7 = vld [vmem:[%s1437_s1 + $0x30] sm:$0xff]  ;;  %s1037_s7 = sshll.u32 %s1443_s6, 4  ;;  %s998_s27 = sshll.u32 %s1443_s6, 3  ;;  %vm573_vm9 = vcmask 7168  }
   0xd   : > { %288 = vperm.xlu1 %1057, %v1000_v0   ;;  %252 = vperm.xlu0 %1056, %v249_v1   ;;  %v1003_v5 = vld [vmem:[%s1437_s1 + $0x28] sm:$0xff]  ;;  %v1005_v8 = vld [vmem:[%s1437_s1 + $0x38] sm:$0xff]  ;;  %v398_v10 = vld [vmem:[%s1438_s2] sm:$0xff]  ;;  %v256_v19 = vshrl.u32 %v255_v18, 7  ;;  %s1175_s10 = scalar_lea.vmem %s1436_s0, %s1037_s7  ;;  %s1400_s24 = scalar_lea.vmem %s1440_s4, %s1037_s7  ;;  %vm581_vm10 = vcmask 15368  }
   0xe   : > { %v1006_v9 = vld [vmem:[%s1438_s2 + $0x8] sm:$0xff]  ;;  %v1008_v11 = vld [vmem:[%s1438_s2 + $0x18] sm:$0xff]  ;;  %v1007_v12 = vld [vmem:[%s1438_s2 + $0x10] sm:$0xff]  ;;  %s245_s30 = scalar_lea.vmem %s1441_s5, %s998_s27 }
   0xf   : > { %v1009_v13 = vld [vmem:[%s1438_s2 + $0x20] sm:$0xff]  ;;  %v1010_v14 = vld [vmem:[%s1438_s2 + $0x28] sm:$0xff]  ;;  %v1011_v15 = vld [vmem:[%s1438_s2 + $0x30] sm:$0xff]  ;;  %v1177_v20 = vsub.s32 0, %v256_v19  ;;  %v1179_v21 = vsub.s32 1, %v256_v19  ;;  %v293_v28 = vsub.s32 2, %v256_v19 }
  0x10   : > { %v1012_v16 = vld [vmem:[%s1438_s2 + $0x38] sm:$0xff]  ;;  %v1013_v17 = vld [vmem:[%s1438_s2 + $0x40] sm:$0xff]  ;;  %v1185_v23 = vld [vmem:[%s1175_s10 + $0x8] sm:$0xff]  ;;  %v1195_v33 = vsub.s32 3, %v256_v19  ;;  %v1199_v42 = vsub.s32 4, %v256_v19  ;;  %v1211_v51 = vsub.s32 5, %v256_v19 }
  0x11   : > { %307 = vperm.xlu1 %1057, %v1001_v3   ;;  %269 = vperm.xlu0 %1056, %v999_v4   ;;  %v1182_v22 = vld [vmem:[%s1175_s10] sm:$0xff]  ;;  %v262_v25 = vrot.slane %v1185_v23, %v1177_v20  ;;  %v279_v30 = vrot.slane %v1185_v23, %v1179_v21  ;;  %v298_v37 = vrot.slane %v1185_v23, %v293_v28  ;;  %v1206_v49 = vld [vmem:[%s1175_s10 + $0x10] sm:$0xff]  ;;  %v1209_v50 = vld [vmem:[%s1175_s10 + $0x18] sm:$0xff] }
  0x12   : > { %v258_v24 = vrot.slane %v1182_v22, %v1177_v20  ;;  %v275_v29 = vrot.slane %v1182_v22, %v1179_v21  ;;  %v294_v36 = vrot.slane %v1182_v22, %v293_v28  ;;  %v313_v47 = vrot.slane %v1182_v22, %v1195_v33 }
  0x13   : > { %v317_v48 = vrot.slane %v1185_v23, %v1195_v33  ;;  %v332_v54 = vrot.slane %v1182_v22, %v1199_v42  ;;  %v611_v56 = vrot.slane %v1206_v49, %v1179_v21  ;;  %v615_v57 = vrot.slane %v1209_v50, %v1179_v21 }
  0x14   : > { %v595_v59 = vrot.slane %v1206_v49, %v1177_v20  ;;  %v599_v60 = vrot.slane %v1209_v50, %v1177_v20  ;;  %v336_v63 = vrot.slane %v1185_v23, %v1199_v42  ;;  %v629_v2 = vrot.slane %v1206_v49, %v293_v28 }
  0x15   : > { %345 = vperm.xlu1 %1057, %v1003_v5   ;;  %326 = vperm.xlu0 %1056, %v1002_v6  }
  0x19   : > { %605 = vperm.xlu1 %1057, %v999_v4   ;;  %589 = vperm.xlu0 %1056, %v249_v1   ;;  %v351_v1 = vrot.slane %v1182_v22, %v1211_v51  ;;  %v355_v4 = vrot.slane %v1185_v23, %v1211_v51 }
  0x1d   : > { %641 = vperm.xlu1 %1057, %v1001_v3   ;;  %623 = vperm.xlu0 %1056, %v1000_v0   ;;  %v1225_v0 = vsub.s32 6, %v256_v19  ;;  %v633_v3 = vrot.slane %v1209_v50, %v293_v28  ;;  %v651_v28 = vrot.slane %v1209_v50, %v1195_v33 }
  0x21   : > { %364 = vperm.xlu1 %1057, %v1004_v7   ;;  %659 = vperm.xlu0 %1056, %v1002_v6  }
  0x25   : > { %383 = vperm.xlu1 %1057, %v1005_v8   ;;  %677 = vperm.xlu0 %1056, %v1003_v5  }
  0x29   : > { %713 = vperm.xlu1 %1057, %v1005_v8   ;;  %695 = vperm.xlu0 %1056, %v1004_v7   ;;  %v1233_v7 = vsub.s32 7, %v256_v19  ;;  %v647_v19 = vrot.slane %v1206_v49, %v1195_v33  ;;  %v665_v33 = vrot.slane %v1206_v49, %v1199_v42 }
  0x2d   : > { %419 = vperm.xlu1 %1057, %v1006_v9   ;;  %401 = vperm.xlu0 %1056, %v398_v10  }
  0x31   : > { %455 = vperm.xlu1 %1057, %v1008_v11   ;;  %437 = vperm.xlu0 %1056, %v1007_v12  }
  0x35   : > { %745 = vperm.xlu1 %1057, %v1006_v9   ;;  %731 = vperm.xlu0 %1056, %v398_v10  }
  0x39   : > { %473 = vperm.xlu1 %1057, %v1009_v13   ;;  %761 = vperm.xlu0 %1056, %v1007_v12  }
  0x3d   : > { %491 = vperm.xlu1 %1057, %v1010_v14   ;;  %777 = vperm.xlu0 %1056, %v1008_v11  }
  0x41   : > { %509 = vperm.xlu1 %1057, %v1011_v15   ;;  %793 = vperm.xlu0 %1056, %v1009_v13  }
  0x45   : > { %527 = vperm.xlu1 %1057, %v1012_v16   ;;  %809 = vperm.xlu0 %1056, %v1010_v14  }
  0x49   : > { %545 = vperm.xlu1 %1057, %v1013_v17   ;;  %825 = vperm.xlu0 %1056, %v1011_v15  }
  0x4d   : > { %857 = vperm.xlu1 %1057, %v1013_v17   ;;  %841 = vperm.xlu0 %1056, %v1012_v16   ;;  %v370_v16 = vrot.slane %v1182_v22, %v1225_v0  ;;  %v374_v17 = vrot.slane %v1185_v23, %v1225_v0 }
  0x88   : > { %v289_v26 = vpop.permute.xlu1 %288  ;;  %v253_v27 = vpop.permute.xlu0 %252 }
  0x89   : > { %v263_v31 = vmul.f32 %v258_v24, %v253_v27  ;;  %v264_v32 = vmul.f32 %v262_v25, %v253_v27  ;;  %v299_v45 = vmul.f32 %v294_v36, %v289_v26  ;;  %v300_v46 = vmul.f32 %v298_v37, %v289_v26 }
  0x8c   : > { %v308_v34 = vpop.permute.xlu1 %307  ;;  %v270_v35 = vpop.permute.xlu0 %269 }
  0x8d   : > { %v280_v38 = vmul.f32 %v275_v29, %v270_v35  ;;  %v281_v39 = vmul.f32 %v279_v30, %v270_v35  ;;  %v318_v61 = vmul.f32 %v313_v47, %v308_v34  ;;  %v319_v62 = vmul.f32 %v317_v48, %v308_v34 }
  0x8e   : > { %v389_v34 = vrot.slane %v1182_v22, %v1233_v7  ;;  %v393_v35 = vrot.slane %v1185_v23, %v1233_v7  ;;  %v683_v23 = vrot.slane %v1206_v49, %v1211_v51 }
  0x8f   : > { %v282_v40 = vadd.f32 %v280_v38, %v263_v31  ;;  %v283_v41 = vadd.f32 %v281_v39, %v264_v32 }
  0x90   : > { %v346_v43 = vpop.permute.xlu1 %345  ;;  %v327_v44 = vpop.permute.xlu0 %326 }
  0x91   : > { %v301_v52 = vadd.f32 %v299_v45, %v282_v40  ;;  %v302_v53 = vadd.f32 %v300_v46, %v283_v41  ;;  %v337_v14 = vmul.f32 %v332_v54, %v327_v44  ;;  %v338_v15 = vmul.f32 %v336_v63, %v327_v44 }
  0x92   : > { %v356_v36 = vmul.f32 %v351_v1, %v346_v43  ;;  %v357_v37 = vmul.f32 %v355_v4, %v346_v43  ;;  %v669_v46 = vrot.slane %v1209_v50, %v1199_v42  ;;  %v687_v43 = vrot.slane %v1209_v50, %v1211_v51 }
  0x93   : > { %v320_v5 = vadd.f32 %v318_v61, %v301_v52  ;;  %v321_v6 = vadd.f32 %v319_v62, %v302_v53  ;;  %v705_v42 = vrot.slane %v1209_v50, %v1225_v0 }
  0x94   : > { %v606_v55 = vpop.permute.xlu1 %605  ;;  %v590_v58 = vpop.permute.xlu0 %589 }
  0x95   : > { %v616_v8 = vmul.f32 %v611_v56, %v606_v55  ;;  %v617_v9 = vmul.f32 %v615_v57, %v606_v55  ;;  %v600_v10 = vmul.f32 %v595_v59, %v590_v58  ;;  %v601_v11 = vmul.f32 %v599_v60, %v590_v58 }
  0x96   : > { %v339_v26 = vadd.f32 %v337_v14, %v320_v5  ;;  %v340_v27 = vadd.f32 %v338_v15, %v321_v6  ;;  %v701_v59 = vrot.slane %v1206_v49, %v1225_v0  ;;  %v723_v0 = vrot.slane %v1209_v50, %v1233_v7 }
  0x97   : > { %v618_v29 = vadd.f32 %v616_v8, %v600_v10  ;;  %v619_v30 = vadd.f32 %v617_v9, %v601_v11  ;;  %v719_v8 = vrot.slane %v1206_v49, %v1233_v7 }
  0x98   : > { %v642_v12 = vpop.permute.xlu1 %641  ;;  %v624_v13 = vpop.permute.xlu0 %623  ;;  %v358_v44 = vadd.f32 %v356_v36, %v339_v26  ;;  %v359_v45 = vadd.f32 %v357_v37, %v340_v27 }
  0x99   : > { %v634_v24 = vmul.f32 %v629_v2, %v624_v13  ;;  %v635_v25 = vmul.f32 %v633_v3, %v624_v13  ;;  %v652_v47 = vmul.f32 %v647_v19, %v642_v12  ;;  %v653_v48 = vmul.f32 %v651_v28, %v642_v12 }
  0x9b   : > { %v636_v40 = vadd.f32 %v634_v24, %v618_v29  ;;  %v637_v41 = vadd.f32 %v635_v25, %v619_v30 }
  0x9c   : > { %v365_v31 = vpop.permute.xlu1 %364  ;;  %v660_v32 = vpop.permute.xlu0 %659 }
  0x9d   : > { %v375_v38 = vmul.f32 %v370_v16, %v365_v31  ;;  %v376_v39 = vmul.f32 %v374_v17, %v365_v31  ;;  %v654_v57 = vadd.f32 %v652_v47, %v636_v40  ;;  %v655_v58 = vadd.f32 %v653_v48, %v637_v41 }
  0x9e   : > { %v670_v60 = vmul.f32 %v665_v33, %v660_v32  ;;  %v671_v61 = vmul.f32 %v669_v46, %v660_v32 }
  0x9f   : > { %v377_v53 = vadd.f32 %v375_v38, %v358_v44  ;;  %v378_v54 = vadd.f32 %v376_v39, %v359_v45 }
  0xa0   : > { %v384_v22 = vpop.permute.xlu1 %383  ;;  %v678_v52 = vpop.permute.xlu0 %677  ;;  %v672_v51 = vadd.f32 %v670_v60, %v654_v57  ;;  %v673_v4 = vadd.f32 %v671_v61, %v655_v58 }
  0xa1   : > { %v394_v55 = vmul.f32 %v389_v34, %v384_v22  ;;  %v395_v56 = vmul.f32 %v393_v35, %v384_v22  ;;  %v688_v2 = vmul.f32 %v683_v23, %v678_v52  ;;  %v689_v3 = vmul.f32 %v687_v43, %v678_v52 }
  0xa2   : > { %v1300_v52 = vand.u32 127, %v255_v18 }
  0xa3   : > { %v396_v62 = vadd.f32 %v394_v55, %v377_v53  ;;  %v397_v63 = vadd.f32 %v395_v56, %v378_v54  ;;  %v690_v10 = vadd.f32 %v688_v2, %v672_v51  ;;  %v691_v11 = vadd.f32 %v689_v3, %v673_v4 }
  0xa4   : > { %v696_v1 = vpop.permute.xlu0 %695  ;;  %v714_v14 = vpop.permute.xlu1 %713  ;;  %vm412_vm0 = vcmp.lt.s32.totalorder %v1300_v52, 127  ;;  %vm430_vm1 = vcmp.lt.s32.totalorder %v1300_v52, 126  ;;  %vm448_vm2 = vcmp.lt.s32.totalorder %v1300_v52, 112  ;;  %vm466_vm3 = vcmp.lt.s32.totalorder %v1300_v52, 111 }
  0xa5   : > { %408 = vrot.lane.b32.xlu0 %v397_v63, %s1067_s19  ;;  %406 = vrot.lane.b32.xlu1 %v396_v62, %s1067_s19  ;;  %v706_v5 = vmul.f32 %v701_v59, %v696_v1  ;;  %v707_v6 = vmul.f32 %v705_v42, %v696_v1  ;;  %v724_v24 = vmul.f32 %v719_v8, %v714_v14  ;;  %vm484_vm4 = vcmp.lt.s32.totalorder %v1300_v52, 110 }
  0xa6   : > { %v725_v49 = vmul.f32 %v723_v0, %v714_v14  ;;  %vm502_vm5 = vcmp.lt.s32.totalorder %v1300_v52, 96  ;;  %vm520_vm6 = vcmp.lt.s32.totalorder %v1300_v52, 95  ;;  %vm538_vm7 = vcmp.lt.s32.totalorder %v1300_v52, 94 }
  0xa7   : > { %v708_v15 = vadd.f32 %v706_v5, %v690_v10  ;;  %v709_v16 = vadd.f32 %v707_v6, %v691_v11 }
  0xa8   : > { %v402_v9 = vpop.permute.xlu0 %401  ;;  %v420_v19 = vpop.permute.xlu1 %419 }
  0xa9   : > { %v1265_v12 = vmul.f32 %v402_v9, %v396_v62  ;;  %v1267_v13 = vmul.f32 %v402_v9, %v397_v63  ;;  %426 = vrot.lane.b32.xlu0 %v396_v62, %s1068_s11  ;;  %428 = vrot.lane.b32.xlu1 %v397_v63, %s1068_s11  ;;  %v726_v50 = vadd.f32 %v724_v24, %v708_v15 }
  0xaa   : > { %v727_v7 = vadd.f32 %v725_v49, %v709_v16 }
  0xac   : > { %v1269_v17 = vpop.permute.xlu0 %437  ;;  %v456_v28 = vpop.permute.xlu1 %455 }
  0xad   : > { %446 = vrot.lane.b32.xlu0 %v397_v63, %s1069_s12  ;;  %444 = vrot.lane.b32.xlu1 %v396_v62, %s1069_s12 }
  0xb0   : > { %v732_v25 = vpop.permute.xlu0 %731  ;;  %v1277_v29 = vpop.permute.xlu1 %745 }
  0xb1   : > { %v1271_v26 = vmul.f32 %v732_v25, %v726_v50  ;;  %v1273_v27 = vmul.f32 %v732_v25, %v727_v7  ;;  %462 = vrot.lane.b32.xlu0 %v396_v62, %s1070_s13  ;;  %464 = vrot.lane.b32.xlu1 %v397_v63, %s1070_s13 }
  0xb4   : > { %v1279_v30 = vpop.permute.xlu0 %761  ;;  %v474_v31 = vpop.permute.xlu1 %473 }
  0xb5   : > { %736 = vrot.lane.b32.xlu0 %v726_v50, %s1067_s19  ;;  %738 = vrot.lane.b32.xlu1 %v727_v7, %s1067_s19 }
  0xb8   : > { %v1281_v32 = vpop.permute.xlu0 %777  ;;  %v492_v34 = vpop.permute.xlu1 %491 }
  0xb9   : > { %752 = vrot.lane.b32.xlu0 %v726_v50, %s1068_s11  ;;  %754 = vrot.lane.b32.xlu1 %v727_v7, %s1068_s11 }
  0xbc   : > { %v1283_v35 = vpop.permute.xlu0 %793  ;;  %v1285_v36 = vpop.permute.xlu1 %509 }
  0xbd   : > { %768 = vrot.lane.b32.xlu0 %v726_v50, %s1069_s12  ;;  %770 = vrot.lane.b32.xlu1 %v727_v7, %s1069_s12 }
  0xc0   : > { %v1287_v37 = vpop.permute.xlu0 %809  ;;  %v1289_v38 = vpop.permute.xlu1 %527 }
  0xc1   : > { %482 = vrot.lane.b32.xlu0 %v397_v63, %s1071_s14  ;;  %480 = vrot.lane.b32.xlu1 %v396_v62, %s1071_s14 }
  0xc4   : > { %v1291_v39 = vpop.permute.xlu0 %825  ;;  %v1293_v40 = vpop.permute.xlu1 %545 }
  0xc5   : > { %784 = vrot.lane.b32.xlu0 %v726_v50, %s1070_s13  ;;  %786 = vrot.lane.b32.xlu1 %v727_v7, %s1070_s13 }
  0xc8   : > { %v1295_v41 = vpop.permute.xlu0 %841  ;;  %v1297_v44 = vpop.permute.xlu1 %857 }
  0xc9   : > { %500 = vrot.lane.b32.xlu0 %v397_v63, %s1072_s15  ;;  %498 = vrot.lane.b32.xlu1 %v396_v62, %s1072_s15 }
  0xcd   : > { %800 = vrot.lane.b32.xlu0 %v726_v50, %s1071_s14  ;;  %802 = vrot.lane.b32.xlu1 %v727_v7, %s1071_s14 }
  0xd1   : > { %518 = vrot.lane.b32.xlu0 %v397_v63, %s1073_s16  ;;  %516 = vrot.lane.b32.xlu1 %v396_v62, %s1073_s16 }
  0xd5   : > { %818 = vrot.lane.b32.xlu0 %v727_v7, %s1072_s15  ;;  %816 = vrot.lane.b32.xlu1 %v726_v50, %s1072_s15 }
  0xd9   : > { %534 = vrot.lane.b32.xlu0 %v396_v62, %s1074_s17  ;;  %536 = vrot.lane.b32.xlu1 %v397_v63, %s1074_s17 }
  0xdd   : > { %832 = vrot.lane.b32.xlu0 %v726_v50, %s1073_s16  ;;  %834 = vrot.lane.b32.xlu1 %v727_v7, %s1073_s16 }
  0xe1   : > { %848 = vrot.lane.b32.xlu0 %v726_v50, %s1074_s17  ;;  %850 = vrot.lane.b32.xlu1 %v727_v7, %s1074_s17 }
 0x117   : > { %v409_v45 = vpop.permute.xlu0 %408  ;;  %v407_v33 = vpop.permute.xlu1 %406 }
 0x118   : > { %v413_v54 = vsel %vm412_vm0, %v407_v33, %v409_v45  ;;  %v414_v55 = vsel %vm412_vm0, %v409_v45, %v407_v33 }
 0x119   : > { %v422_v58 = vmul.f32 %v420_v19, %v413_v54  ;;  %v423_v59 = vmul.f32 %v420_v19, %v414_v55 }
 0x11b   : > { %v427_v46 = vpop.permute.xlu0 %426  ;;  %v429_v47 = vpop.permute.xlu1 %428  ;;  %v424_v51 = vadd.f32 %v422_v58, %v1265_v12  ;;  %v425_v4 = vadd.f32 %v423_v59, %v1267_v13 }
 0x11c   : > { %v431_v18 = vsel %vm430_vm1, %v427_v46, %v429_v47  ;;  %v432_v57 = vsel %vm430_vm1, %v429_v47, %v427_v46 }
 0x11d   : > { %v440_v63 = vmul.f32 %v1269_v17, %v431_v18  ;;  %v441_v1 = vmul.f32 %v1269_v17, %v432_v57 }
 0x11f   : > { %v447_v48 = vpop.permute.xlu0 %446  ;;  %v445_v22 = vpop.permute.xlu1 %444  ;;  %v442_v9 = vadd.f32 %v440_v63, %v424_v51  ;;  %v443_v10 = vadd.f32 %v441_v1, %v425_v4 }
 0x120   : > { %v449_v60 = vsel %vm448_vm2, %v445_v22, %v447_v48  ;;  %v450_v61 = vsel %vm448_vm2, %v447_v48, %v445_v22 }
 0x121   : > { %v458_v5 = vmul.f32 %v456_v28, %v449_v60  ;;  %v459_v6 = vmul.f32 %v456_v28, %v450_v61 }
 0x123   : > { %v463_v23 = vpop.permute.xlu0 %462  ;;  %v465_v43 = vpop.permute.xlu1 %464  ;;  %v460_v15 = vadd.f32 %v458_v5, %v442_v9  ;;  %v461_v16 = vadd.f32 %v459_v6, %v443_v10 }
 0x124   : > { %v467_v2 = vsel %vm466_vm3, %v463_v23, %v465_v43  ;;  %v468_v3 = vsel %vm466_vm3, %v465_v43, %v463_v23 }
 0x125   : > { %v476_v11 = vmul.f32 %v474_v31, %v467_v2  ;;  %v477_v14 = vmul.f32 %v474_v31, %v468_v3 }
 0x127   : > { %v737_v53 = vpop.permute.xlu0 %736  ;;  %v739_v56 = vpop.permute.xlu1 %738  ;;  %v478_v49 = vadd.f32 %v476_v11, %v460_v15  ;;  %v479_v50 = vadd.f32 %v477_v14, %v461_v16 }
 0x128   : > { %v740_v24 = vsel %vm412_vm0, %v737_v53, %v739_v56  ;;  %v741_v12 = vsel %vm412_vm0, %v739_v56, %v737_v53 }
 0x129   : > { %v748_v33 = vmul.f32 %v1277_v29, %v740_v24  ;;  %v749_v46 = vmul.f32 %v1277_v29, %v741_v12 }
 0x12b   : > { %v753_v42 = vpop.permute.xlu0 %752  ;;  %v755_v62 = vpop.permute.xlu1 %754  ;;  %v751_v29 = vadd.f32 %v749_v46, %v1273_v27 }
 0x12c   : > { %v756_v19 = vsel %vm430_vm1, %v753_v42, %v755_v62  ;;  %v757_v28 = vsel %vm430_vm1, %v755_v62, %v753_v42 }
 0x12d   : > { %v764_v43 = vmul.f32 %v1279_v30, %v756_v19  ;;  %v765_v53 = vmul.f32 %v1279_v30, %v757_v28  ;;  %v555_v19 = vld [vmem:[%s1439_s3] sm:$0x3] }
 0x12f   : > { %v769_v8 = vpop.permute.xlu0 %768  ;;  %v771_v0 = vpop.permute.xlu1 %770  ;;  %v767_v60 = vadd.f32 %v765_v53, %v751_v29 }
 0x130   : > { %v772_v54 = vsel %vm448_vm2, %v769_v8, %v771_v0  ;;  %v773_v55 = vsel %vm448_vm2, %v771_v0, %v769_v8 }
 0x131   : > { %v780_v30 = vmul.f32 %v1281_v32, %v772_v54  ;;  %v781_v58 = vmul.f32 %v1281_v32, %v773_v55 }
 0x133   : > { %v483_v17 = vpop.permute.xlu0 %482  ;;  %v481_v13 = vpop.permute.xlu1 %480  ;;  %v783_v32 = vadd.f32 %v781_v58, %v767_v60 }
 0x134   : > { %v485_v7 = vsel %vm484_vm4, %v481_v13, %v483_v17  ;;  %v486_v25 = vsel %vm484_vm4, %v483_v17, %v481_v13 }
 0x135   : > { %v494_v31 = vmul.f32 %v492_v34, %v485_v7  ;;  %v495_v45 = vmul.f32 %v492_v34, %v486_v25  ;;  %v750_v34 = vadd.f32 %v748_v33, %v1271_v26 }
 0x137   : > { %v785_v47 = vpop.permute.xlu0 %784  ;;  %v496_v48 = vadd.f32 %v494_v31, %v478_v49  ;;  %v497_v22 = vadd.f32 %v495_v45, %v479_v50  ;;  %v787_v23 = vpop.permute.xlu1 %786  ;;  %v766_v42 = vadd.f32 %v764_v43, %v750_v34 }
 0x138   : > { %v788_v56 = vsel %vm466_vm3, %v785_v47, %v787_v23  ;;  %v789_v18 = vsel %vm466_vm3, %v787_v23, %v785_v47 }
 0x139   : > { %v796_v27 = vmul.f32 %v1283_v35, %v788_v56  ;;  %v797_v62 = vmul.f32 %v1283_v35, %v789_v18  ;;  %v782_v3 = vadd.f32 %v780_v30, %v766_v42 }
 0x13b   : > { %v501_v57 = vpop.permute.xlu0 %500  ;;  %v499_v59 = vpop.permute.xlu1 %498  ;;  %v798_v0 = vadd.f32 %v796_v27, %v782_v3  ;;  %v799_v9 = vadd.f32 %v797_v62, %v783_v32 }
 0x13c   : > { %v503_v61 = vsel %vm502_vm5, %v499_v59, %v501_v57  ;;  %v504_v26 = vsel %vm502_vm5, %v501_v57, %v499_v59 }
 0x13d   : > { %v512_v63 = vmul.f32 %v1285_v36, %v503_v61  ;;  %v513_v1 = vmul.f32 %v1285_v36, %v504_v26 }
 0x13f   : > { %v801_v2 = vpop.permute.xlu0 %800  ;;  %v514_v51 = vadd.f32 %v512_v63, %v496_v48  ;;  %v515_v4 = vadd.f32 %v513_v1, %v497_v22  ;;  %v803_v5 = vpop.permute.xlu1 %802  ;;  %v564_v48 = vrot.slane %v555_v19, %v1179_v21 }
 0x140   : > { %v804_v6 = vsel %vm484_vm4, %v801_v2, %v803_v5  ;;  %v805_v8 = vsel %vm484_vm4, %v803_v5, %v801_v2 }
 0x141   : > { %v812_v35 = vmul.f32 %v1287_v37, %v804_v6  ;;  %v813_v10 = vmul.f32 %v1287_v37, %v805_v8 }
 0x143   : > { %v519_v11 = vpop.permute.xlu0 %518  ;;  %v814_v36 = vadd.f32 %v812_v35, %v798_v0  ;;  %v815_v14 = vadd.f32 %v813_v10, %v799_v9  ;;  %v517_v15 = vpop.permute.xlu1 %516 }
 0x144   : > { %v521_v16 = vsel %vm520_vm6, %v517_v15, %v519_v11  ;;  %v522_v17 = vsel %vm520_vm6, %v519_v11, %v517_v15 }
 0x145   : > { %v530_v49 = vmul.f32 %v1289_v38, %v521_v16  ;;  %v531_v50 = vmul.f32 %v1289_v38, %v522_v17  ;;  %v560_v38 = vrot.slane %v555_v19, %v1177_v20 }
 0x147   : > { %v819_v24 = vpop.permute.xlu0 %818  ;;  %v817_v12 = vpop.permute.xlu1 %816  ;;  %v532_v22 = vadd.f32 %v530_v49, %v514_v51 }
 0x148   : > { %v820_v13 = vsel %vm502_vm5, %v817_v12, %v819_v24  ;;  %v821_v37 = vsel %vm502_vm5, %v819_v24, %v817_v12 }
 0x149   : > { %v828_v7 = vmul.f32 %v1291_v39, %v820_v13  ;;  %v829_v25 = vmul.f32 %v1291_v39, %v821_v37  ;;  %v533_v39 = vadd.f32 %v531_v50, %v515_v4 }
 0x14b   : > { %v535_v28 = vpop.permute.xlu0 %534  ;;  %v830_v31 = vadd.f32 %v828_v7, %v814_v36  ;;  %v831_v45 = vadd.f32 %v829_v25, %v815_v14  ;;  %v537_v33 = vpop.permute.xlu1 %536 }
 0x14c   : > { %v539_v46 = vsel %vm538_vm7, %v535_v28, %v537_v33  ;;  %v540_v47 = vsel %vm538_vm7, %v537_v33, %v535_v28 }
 0x14d   : > { %v548_v23 = vmul.f32 %v1293_v40, %v539_v46  ;;  %v549_v43 = vmul.f32 %v1293_v40, %v540_v47  ;;  %v867_v40 = vld [vmem:[%s1439_s3] sm:$0x3] }
 0x14e   : > { %v872_v26 = vrot.slane %v867_v40, %v1177_v20  ;;  %v876_v27 = vrot.slane %v867_v40, %v1179_v21 }
 0x14f   : > { %v833_v53 = vpop.permute.xlu0 %832  ;;  %v550_v54 = vadd.f32 %v548_v23, %v532_v22  ;;  %v551_v55 = vadd.f32 %v549_v43, %v533_v39  ;;  %v835_v34 = vpop.permute.xlu1 %834 }
 0x150   : > { %v836_v29 = vsel %vm520_vm6, %v833_v53, %v835_v34  ;;  %v837_v56 = vsel %vm520_vm6, %v835_v34, %v833_v53 }
 0x151   : > { %552 = vst [vmem:[%s1400_s24] sm:$0xff] %v550_v54  ;;  %554 = vst.msk [vmem:[%s1400_s24 + $0x8] sm:$0xff] %vm553_vm8, %v551_v55  ;;  %v844_v18 = vmul.f32 %v1295_v41, %v836_v29  ;;  %v845_v57 = vmul.f32 %v1295_v41, %v837_v56  ;;  %v567_v30 = vmul.f32 %v560_v38, %v550_v54 }
 0x152   : > { %v568_v58 = vmul.f32 %v564_v48, %v551_v55 }
 0x153   : > { %v849_v59 = vpop.permute.xlu0 %848  ;;  %v851_v42 = vpop.permute.xlu1 %850  ;;  %v575_v61 = vmul.f32 %v567_v30, %v567_v30  ;;  %v846_v2 = vadd.f32 %v844_v18, %v830_v31  ;;  %v847_v3 = vadd.f32 %v845_v57, %v831_v45 }
 0x154   : > { %v569_v60 = vsel %vm553_vm8, %v568_v58, 0.0  ;;  %v852_v62 = vsel %vm538_vm7, %v849_v59, %v851_v42  ;;  %v853_v63 = vsel %vm538_vm7, %v851_v42, %v849_v59  ;;  %v576_v1 = vmul.f32 %v568_v58, %v568_v58 }
 0x155   : > { %v570_v41 = vadd.f32 %v569_v60, %v567_v30  ;;  %v860_v32 = vmul.f32 %v1297_v44, %v852_v62  ;;  %v861_v51 = vmul.f32 %v1297_v44, %v853_v63 }
 0x156   : > { %v577_v20 = vsel %vm553_vm8, %v576_v1, 0.0 }
 0x157   : > { %571 = vadd.xlane.f32.xlu0 %v570_v41  ;;  %v862_v4 = vadd.f32 %v860_v32, %v846_v2  ;;  %v863_v21 = vadd.f32 %v861_v51, %v847_v3  ;;  %v578_v5 = vadd.f32 %v577_v20, %v575_v61 }
 0x159   : > { %1031 = vst [vmem:[%s1400_s24 + $0x10] sm:$0xff] %v862_v4  ;;  %1032 = vst.msk [vmem:[%s1400_s24 + $0x18] sm:$0xff] %vm553_vm8, %v863_v21  ;;  %579 = vadd.xlane.f32.xlu1 %v578_v5  ;;  %v879_v52 = vmul.f32 %v872_v26, %v862_v4  ;;  %v880_v6 = vmul.f32 %v876_v27, %v863_v21 }
 0x15b   : > { %v881_v8 = vsel %vm553_vm8, %v880_v6, 0.0  ;;  %v887_v0 = vmul.f32 %v879_v52, %v879_v52  ;;  %v888_v9 = vmul.f32 %v880_v6, %v880_v6 }
 0x15c   : > { %v882_v35 = vadd.f32 %v881_v8, %v879_v52 }
 0x15d   : > { %v889_v44 = vsel %vm553_vm8, %v888_v9, 0.0 }
 0x15e   : > { %883 = vadd.xlane.f32.xlu0 %v882_v35  ;;  %v890_v10 = vadd.f32 %v889_v44, %v887_v0 }
 0x162   : > { %891 = vadd.xlane.f32.xlu0 %v890_v10 }
 0x1e0   : > { %v572_v11 = vpop.xlane.xlu0 %571 }
 0x1e1   : > { %574 = vst.msk [vmem:[%s245_s30] sm:$0xff] %vm573_vm9, %v572_v11 }
 0x1e2   : > { %v580_v36 = vpop.xlane.xlu1 %579 }
 0x1e3   : > { %582 = vst.msk [vmem:[%s245_s30] sm:$0xff] %vm581_vm10, %v580_v36 }
 0x1e7   : > { %v884_v14 = vpop.xlane.xlu0 %883 }
 0x1e8   : > { %1033 = vst.msk [vmem:[%s245_s30 + $0x8] sm:$0xff] %vm573_vm9, %v884_v14 }
 0x1eb   : > { %v892_v15 = vpop.xlane.xlu0 %891 }
 0x1ec   : > { %1034 = vst.msk [vmem:[%s245_s30 + $0x8] sm:$0xff] %vm581_vm10, %v892_v15 }
 0x1ed PF: > { %s16_s18 = sadd.s32 1, %s1064_s18  }
 0x1ee   : > { %p13_p4 = scmp.ge.s32.totalorder %s16_s18, 4  }
 0x1f0   :  { %15 = sbr.rel (!%p13_p4) target bundleno = 1 (0x1), region = 96 }

</bundles_post_ra>
